<compile_context>
chip_gen: v5e
topology: v5e:2x2
jax: 0.10.0
libtpu: 0.0.40
codegen_flags: <defaults>
</compile_context>

<pallas_src>
import functools
import math

import jax
import jax.numpy as jnp
from jax.experimental import pallas as pl
from jax.experimental.pallas import tpu as pltpu

_LANE = 128
_LANCZOS_G = 7.0
_LANCZOS_COEF = (
    0.99999999999980993,
    676.5203681218851,
    -1259.1392167224028,
    771.32342877765313,
    -176.61502916214059,
    12.507343278686905,
    -0.13857109526572012,
    9.9843695780195716e-6,
    1.5056327351493116e-7,
)


def _round_up(n, m):
    return ((n + m - 1) // m) * m


# ----------------------------- in-kernel special functions -------------------

def _lgamma(x):
    """log Gamma(x), x > 0, Lanczos approximation (2 divides/element)."""
    xm1 = x - 1.0
    num1 = jnp.full_like(x, _LANCZOS_COEF[0])
    den1 = jnp.ones_like(x)
    for i in range(1, 5):
        t = xm1 + float(i)
        num1 = num1 * t + _LANCZOS_COEF[i] * den1
        den1 = den1 * t
    num2 = jnp.zeros_like(x)
    den2 = jnp.ones_like(x)
    for i in range(5, 9):
        t = xm1 + float(i)
        num2 = num2 * t + _LANCZOS_COEF[i] * den2
        den2 = den2 * t
    a = num1 / den1 + num2 / den2
    t = xm1 + _LANCZOS_G + 0.5
    return (0.5 * math.log(2.0 * math.pi)
            + (xm1 + 0.5) * jnp.log(t) - t + jnp.log(a))


def _digamma(x):
    """digamma(x), x > 0: 6-step shift folded into one divide + asymptotics."""
    num = jnp.zeros_like(x)
    den = jnp.ones_like(x)
    for k in range(6):
        t = x + float(k)
        num = num * t + den
        den = den * t
    shift = num / den                       # = sum_{k=0..5} 1/(x+k)
    y = x + 6.0
    inv = 1.0 / y
    inv2 = inv * inv
    return (jnp.log(y) - 0.5 * inv
            - inv2 * (1.0 / 12.0 - inv2 * (1.0 / 120.0 - inv2 / 252.0))
            - shift)


def _batchnorm1d(h, gamma, beta, n, eps=1e-5):
    """Training-mode BatchNorm1d, two-pass (centered) biased batch variance."""
    inv_n = 1.0 / float(n)
    mean = jnp.sum(h, axis=0, keepdims=True) * inv_n
    d = h - mean
    var = jnp.sum(d * d, axis=0, keepdims=True) * inv_n
    return d * (gamma * jax.lax.rsqrt(var + eps)) + beta


# ----------------------------- kernel A: encoder K reduction ------------------

def _enc_reduce_kernel(x_ref, w1_ref, acc_ref):
    @pl.when(pl.program_id(0) == 0)
    def _init():
        acc_ref[...] = jnp.zeros_like(acc_ref)

    acc_ref[...] += jnp.dot(x_ref[...].astype(jnp.bfloat16), w1_ref[...],
                            preferred_element_type=jnp.float32)


# ----------------------------- kernel B: encoder tail MLP ---------------------

def _enc_tail_kernel(acc_ref, b1_ref, w2_ref, b2_ref, g1_ref, be1_ref,
                     w3_ref, b3_ref, g2_ref, be2_ref,
                     alpha_ref, pround_ref, *, delta, batch):
    h = jnp.maximum(acc_ref[...] + b1_ref[...], 0.0)                      # ReLU
    h = jnp.dot(h, w2_ref[...], preferred_element_type=jnp.float32) + b2_ref[...]
    h = jnp.maximum(_batchnorm1d(h, g1_ref[...], be1_ref[...], batch), 0.0)
    a = jnp.dot(h, w3_ref[...], preferred_element_type=jnp.float32) + b3_ref[...]
    a = _batchnorm1d(a, g2_ref[...], be2_ref[...], batch)
    a = jnp.clip(jnp.exp(a * 0.25), 0.0, 30.0)                            # hardtanh(0,30)
    alpha_ref[...] = a
    # NOTE: delta=1e10 exceeds f32 integer precision, so pround == alpha almost
    # everywhere -- identical to the f32 torch-default semantics.
    pround_ref[...] = jnp.floor(delta * a) / delta


# ----------------------------- kernel C: RRT + decoder + stats ----------------

def _decode_stats_kernel(x_ref, alpha_ref, pround_ref, samp_ref, wd_ref, dp_ref,
                         z_ref, logz_ref, loss_ref, kl_ref,
                         p_sc, m_sc, l_sc, sxz_sc, sx_sc,
                         *, lambda_, prior_alpha, num_topics, batch,
                         v_real, v_tile, t_pad):
    j = pl.program_id(0)
    n_vt = pl.num_programs(0)

    t_mask = None
    if t_pad != num_topics:
        t_mask = jax.lax.broadcasted_iota(jnp.int32, (1, t_pad), 1) < num_topics

    # ---- one-time init: RRT topic mixture p + online-softmax state ----------
    @pl.when(j == 0)
    def _init():
        m_sc[...] = jnp.full_like(m_sc, -1e30)
        l_sc[...] = jnp.zeros_like(l_sc)
        sxz_sc[...] = jnp.zeros_like(sxz_sc)
        sx_sc[...] = jnp.zeros_like(sx_sc)
        p = samp_ref[...] + (alpha_ref[...] - pround_ref[...]) * lambda_
        if t_mask is not None:
            p = jnp.where(t_mask, p, 0.0)
        p_sc[...] = p / jnp.sum(p, axis=1, keepdims=True)

    # ---- decoder logits + BatchNorm1d for this vocab tile (single wd pass) --
    bd = dp_ref[0:1, :]
    gd = dp_ref[1:2, :]
    bed = dp_ref[2:3, :]
    z = jnp.dot(p_sc[...].astype(jnp.bfloat16), wd_ref[...],
                preferred_element_type=jnp.float32) + bd
    z = _batchnorm1d(z, gd, bed, batch)
    z_ref[...] = z                       # raw logits out; normalized by kernel D

    v_mask = None
    if v_real % v_tile != 0:
        col = j * v_tile + jax.lax.broadcasted_iota(jnp.int32, (1, v_tile), 1)
        v_mask = col < v_real

    # ---- online softmax stats + NLL partial sums from logits ----------------
    zm = z if v_mask is None else jnp.where(v_mask, z, -1e30)
    m_old = m_sc[...]
    m_new = jnp.maximum(m_old, jnp.max(zm, axis=1, keepdims=True))
    e = jnp.exp(z - m_new)
    if v_mask is not None:
        e = jnp.where(v_mask, e, 0.0)
    l_sc[...] = l_sc[...] * jnp.exp(m_old - m_new) + jnp.sum(e, axis=1, keepdims=True)
    m_sc[...] = m_new
    xt = x_ref[...]
    sxz_sc[...] += jnp.sum(xt * z, axis=1, keepdims=True)
    sx_sc[...] += jnp.sum(xt, axis=1, keepdims=True)

    # ---- final iteration: logZ, NLL + Dirichlet KL, scalar means ------------
    @pl.when(j == n_vt - 1)
    def _finalize():
        log_z = m_sc[...] + jnp.log(l_sc[...])
        logz_ref[...] = log_z
        alpha = alpha_ref[...]
        lg_a = _lgamma(alpha)
        term = (alpha - prior_alpha) * _digamma(alpha)
        if t_mask is not None:
            alpha_m = jnp.where(t_mask, alpha, 0.0)
            lg_a = jnp.where(t_mask, lg_a, 0.0)
            term = jnp.where(t_mask, term, 0.0)
        else:
            alpha_m = alpha
        asum = jnp.sum(alpha_m, axis=1, keepdims=True)                    # [B,1]
        const = (num_topics * math.lgamma(prior_alpha)
                 - math.lgamma(num_topics * prior_alpha))
        kl = (_lgamma(asum) - jnp.sum(lg_a, axis=1, keepdims=True) + const
              + jnp.sum(term, axis=1, keepdims=True)
              - (asum - num_topics * prior_alpha) * _digamma(asum))       # [B,1]
        # NLL from logits:  -sum_v x * (z - logZ) = sx*logZ - sxz
        nll = sx_sc[...] * log_z - sxz_sc[...]                            # [B,1]
        inv_b = 1.0 / float(batch)
        loss_ref[...] = jnp.sum(nll + kl, axis=0, keepdims=True) * inv_b  # [1,1]
        kl_ref[...] = jnp.sum(kl, axis=0, keepdims=True) * inv_b          # [1,1]


# ----------------------------- kernel D: softmax normalization ----------------

def _normalize_kernel(logz_ref, z_ref, recon_ref):
    recon_ref[...] = jnp.exp(z_ref[...] - logz_ref[...])


# ----------------------------- wrapper ----------------------------------------

def _tpu_budget():
    """Generation-aware VMEM limit and default vocab tile."""
    try:
        cap = int(pltpu.get_tpu_info().vmem_capacity_bytes)
    except Exception:
        cap = 64 * 1024 * 1024          # conservative fallback (v7x-sized)
    if cap >= 96 * 1024 * 1024:         # v5e / v6e: 128 MiB physical VMEM
        return 100 * 1024 * 1024, 1024
    return 48 * 1024 * 1024, 512        # v7x: 64 MiB physical VMEM


def rrtvae_forward(x, params, sample_key, *, lambda_=0.01, delta=1e10,
                   prior_alpha=1.0, vocab_tile=None):
    x = x.astype(jnp.float32)
    B, V = x.shape
    H = params["w2"].shape[0]
    T = params["w3"].shape[1]

    vmem_limit, default_tile = _tpu_budget()
    if vocab_tile is None:
        vocab_tile = default_tile

    Vp0 = _round_up(V, _LANE)
    TV = min(vocab_tile, Vp0)
    Vp = _round_up(V, TV)
    Hp = _round_up(H, _LANE)
    Tp = _round_up(T, _LANE)
    n_vt = Vp // TV

    def pad2(a, r, c):
        return jnp.pad(a, ((0, r - a.shape[0]), (0, c - a.shape[1])))

    xp = pad2(x, B, Vp)
    # Dominant streamed weights in bf16 (halves HBM bytes); f32 accumulation.
    w1 = pad2(params["w1"], Vp, Hp).astype(jnp.bfloat16)
    b1 = pad2(params["b1"], 1, Hp)
    w2 = pad2(params["w2"], Hp, Hp); b2 = pad2(params["b2"], 1, Hp)
    g1 = pad2(params["g1"], 1, Hp); be1 = pad2(params["be1"], 1, Hp)
    w3 = pad2(params["w3"], Hp, Tp); b3 = pad2(params["b3"], 1, Tp)
    g2 = pad2(params["g2"], 1, Tp); be2 = pad2(params["be2"], 1, Tp)
    wd = pad2(params["wd"], Tp, Vp).astype(jnp.bfloat16)
    # bd/gd/bed packed into one (8, Vp) array -> one DMA per vocab tile.
    dpk = pad2(jnp.concatenate([params["bd"], params["gd"], params["bed"]],
                               axis=0), 8, Vp)

    cparams = functools.partial(pltpu.CompilerParams,
                                vmem_limit_bytes=vmem_limit)

    def stream_spec(block, index_map):
        # 3-deep buffering on the big streamed weight when the grid is long
        # enough to profit from it.
        if n_vt >= 3:
            return pl.BlockSpec(block, index_map, pipeline_mode=pl.Buffered(3))
        return pl.BlockSpec(block, index_map)

    def pinned_spec(block, index_map):
        # grid-invariant operand: single VMEM buffer, fetched once.
        return pl.BlockSpec(block, index_map, pipeline_mode=pl.Buffered(1))

    # --- kernel A: vocab-tiled K reduction of the first encoder Linear -------
    # TODO(synk): on v7x the reduction (and kernel C's streaming loop) could
    # additionally be split across the 2 TensorCores with per-core partial
    # accumulators; left single-core here.
    hacc = pl.pallas_call(
        _enc_reduce_kernel,
        grid=(n_vt,),
        in_specs=[pl.BlockSpec((B, TV), lambda k: (0, k)),
                  stream_spec((TV, Hp), lambda k: (k, 0))],
        out_specs=pl.BlockSpec((B, Hp), lambda k: (0, 0)),
        out_shape=jax.ShapeDtypeStruct((B, Hp), jnp.float32),
        compiler_params=cparams(dimension_semantics=("arbitrary",)),
    )(xp, w1)

    # --- kernel B: encoder tail MLP (single invocation, fully VMEM resident) -
    alpha_p, pround_p = pl.pallas_call(
        functools.partial(_enc_tail_kernel, delta=delta, batch=B),
        out_shape=(jax.ShapeDtypeStruct((B, Tp), jnp.float32),
                   jax.ShapeDtypeStruct((B, Tp), jnp.float32)),
        compiler_params=cparams(),
    )(hacc, b1, w2, b2, g1, be1, w3, b3, g2, be2)

    # --- glue: Dirichlet sampling (RealSampler) -------------------------------
    # TODO(synk): the gamma rejection sampler inside Dirichlet has no clean
    # Pallas equivalent; it stays as a jax.random op between the kernels.
    pround_real = pround_p[:, :T]
    sample = jax.random.dirichlet(sample_key, pround_real).astype(jnp.float32)
    sample_p = jnp.pad(sample, ((0, 0), (0, Tp - T)))

    # --- kernel C: RRT mix + decoder + BN + online-softmax stats + NLL/KL -----
    logits, logz, loss_m, kl_m = pl.pallas_call(
        functools.partial(_decode_stats_kernel, lambda_=lambda_,
                          prior_alpha=prior_alpha, num_topics=T, batch=B,
                          v_real=V, v_tile=TV, t_pad=Tp),
        grid=(n_vt,),
        in_specs=[
            pl.BlockSpec((B, TV), lambda j: (0, j)),        # x tile
            pinned_spec((B, Tp), lambda j: (0, 0)),         # alpha
            pinned_spec((B, Tp), lambda j: (0, 0)),         # pround
            pinned_spec((B, Tp), lambda j: (0, 0)),         # dirichlet sample
            stream_spec((Tp, TV), lambda j: (0, j)),        # wd tile (bf16)
            pl.BlockSpec((8, TV), lambda j: (0, j)),        # packed bd/gd/bed
        ],
        out_specs=(
            pl.BlockSpec((B, TV), lambda j: (0, j)),        # raw logits
            pl.BlockSpec((B, 1), lambda j: (0, 0)),         # log partition
            pl.BlockSpec((1, 1), lambda j: (0, 0)),         # mean loss
            pl.BlockSpec((1, 1), lambda j: (0, 0)),         # mean KL
        ),
        out_shape=(jax.ShapeDtypeStruct((B, Vp), jnp.float32),
                   jax.ShapeDtypeStruct((B, 1), jnp.float32),
                   jax.ShapeDtypeStruct((1, 1), jnp.float32),
                   jax.ShapeDtypeStruct((1, 1), jnp.float32)),
        scratch_shapes=[
            pltpu.VMEM((B, Tp), jnp.float32),   # p (RRT mixture)
            pltpu.VMEM((B, 1), jnp.float32),    # running row max
            pltpu.VMEM((B, 1), jnp.float32),    # running exp-sum
            pltpu.VMEM((B, 1), jnp.float32),    # sum_v x*z
            pltpu.VMEM((B, 1), jnp.float32),    # sum_v x
        ],
        compiler_params=cparams(dimension_semantics=("arbitrary",)),
    )(xp, alpha_p, pround_p, sample_p, wd, dpk)

    # --- kernel D: recon = exp(z - logZ), in-place on the logits buffer -------
    recon_p = pl.pallas_call(
        _normalize_kernel,
        grid=(n_vt,),
        in_specs=[pinned_spec((B, 1), lambda j: (0, 0)),
                  pl.BlockSpec((B, TV), lambda j: (0, j))],
        out_specs=pl.BlockSpec((B, TV), lambda j: (0, j)),
        out_shape=jax.ShapeDtypeStruct((B, Vp), jnp.float32),
        input_output_aliases={1: 0},
        compiler_params=cparams(dimension_semantics=("parallel",)),
    )(logz, logits)

    recon = recon_p[:, :V]
    return recon, (loss_m[0, 0], kl_m[0, 0]), sample


# ----------------------------- deterministic params ---------------------------

def init_params(key, vocab_size, num_topics, hidden_size):
    ks = jax.random.split(key, 8)

    def lin(kw, kb, fan_in, fan_out):
        bound = 1.0 / math.sqrt(fan_in)
        w = jax.random.uniform(kw, (fan_in, fan_out), jnp.float32, -bound, bound)
        b = jax.random.uniform(kb, (1, fan_out), jnp.float32, -bound, bound)
        return w, b

    w1, b1 = lin(ks[0], ks[1], vocab_size, hidden_size)
    w2, b2 = lin(ks[2], ks[3], hidden_size, hidden_size)
    w3, b3 = lin(ks[4], ks[5], hidden_size, num_topics)
    # decoder.weight.data.uniform_(0, 1); stored transposed as [T, V]
    wd = jax.random.uniform(ks[6], (num_topics, vocab_size), jnp.float32, 0.0, 1.0)
    bd = jax.random.uniform(ks[7], (1, vocab_size), jnp.float32,
                            -1.0 / math.sqrt(num_topics), 1.0 / math.sqrt(num_topics))
    return {
        "w1": w1, "b1": b1,
        "w2": w2, "b2": b2,
        "g1": jnp.ones((1, hidden_size), jnp.float32),
        "be1": jnp.zeros((1, hidden_size), jnp.float32),
        "w3": w3, "b3": b3,
        "g2": jnp.ones((1, num_topics), jnp.float32),
        "be2": jnp.zeros((1, num_topics), jnp.float32),
        "wd": wd, "bd": bd,
        "gd": jnp.ones((1, vocab_size), jnp.float32),
        "bed": jnp.zeros((1, vocab_size), jnp.float32),
    }


# ----------------------------- pure-JAX reference (test only) -----------------

def _reference_forward(x, params, sample, lambda_, delta, prior_alpha):
    hp = jax.lax.Precision.HIGHEST

    def bn(h, g, b, eps=1e-5):
        m = jnp.mean(h, axis=0, keepdims=True)
        v = jnp.mean((h - m) ** 2, axis=0, keepdims=True)
        return (h - m) / jnp.sqrt(v + eps) * g + b

    h = jax.nn.relu(jnp.dot(x, params["w1"], precision=hp) + params["b1"])
    h = jax.nn.relu(bn(jnp.dot(h, params["w2"], precision=hp) + params["b2"],
                       params["g1"], params["be1"]))
    a = bn(jnp.dot(h, params["w3"], precision=hp) + params["b3"],
           params["g2"], params["be2"])
    alpha = jnp.clip(jnp.exp(a / 4.0), 0.0, 30.0)
    pround = jnp.floor(delta * alpha) / delta
    p = sample + (alpha - pround) * lambda_
    p = p / jnp.sum(p, axis=1, keepdims=True)
    logits = bn(jnp.dot(p, params["wd"], precision=hp) + params["bd"],
                params["gd"], params["bed"])
    recon = jax.nn.softmax(logits, axis=1)
    nll = -jnp.sum(x * jnp.log(recon + 1e-10), axis=1)
    T = alpha.shape[1]
    asum = jnp.sum(alpha, axis=1)
    kl = (jax.scipy.special.gammaln(asum)
          - jnp.sum(jax.scipy.special.gammaln(alpha), axis=1)
          - math.lgamma(T * prior_alpha) + T * math.lgamma(prior_alpha)
          + jnp.sum((alpha - prior_alpha)
                    * (jax.scipy.special.digamma(alpha)
                       - jax.scipy.special.digamma(asum)[:, None]), axis=1))
    loss = nll + kl
    return recon, jnp.mean(loss), jnp.mean(kl)


if __name__ == "__main__":
    VOCAB, TOPICS, HIDDEN, BATCH = 64, 8, 32, 8

    key = jax.random.PRNGKey(0)
    k_param, k_data, k_sample = jax.random.split(key, 3)

    params = init_params(k_param, VOCAB, TOPICS, HIDDEN)
    # bag-of-words-like non-negative inputs
    x = jax.random.uniform(k_data, (BATCH, VOCAB), jnp.float32, 0.0, 5.0)

    fwd = jax.jit(lambda xx, kk: rrtvae_forward(xx, params, kk))
    recon, (loss_mean, kl_mean), sample = fwd(x, k_sample)
    jax.block_until_ready((recon, loss_mean, kl_mean, sample))

    assert recon.shape == (BATCH, VOCAB)
    assert bool(jnp.all(jnp.isfinite(recon)))
    assert bool(jnp.isfinite(loss_mean)) and bool(jnp.isfinite(kl_mean))
    assert bool(jnp.allclose(jnp.sum(recon, axis=1), 1.0, atol=1e-2))

    # Cross-check against a pure-JAX f32 reference using the same Dirichlet
    # sample.  Absolute slack is slightly wider than the all-f32 version since
    # the kernels stream w1/wd in bf16.
    recon_ref, loss_ref_v, kl_ref_v = _reference_forward(
        x, params, sample, 0.01, 1e10, 1.0)
    assert bool(jnp.allclose(recon, recon_ref, rtol=2e-2, atol=5e-3))
    assert abs(float(loss_mean - loss_ref_v)) <= 0.02 * abs(float(loss_ref_v)) + 0.1
    assert abs(float(kl_mean - kl_ref_v)) <= 0.02 * abs(float(kl_ref_v)) + 0.1

    print("KERNEL_OK")
</pallas_src>

<mosaic_0001>
module attributes {stable_mosaic.version = 11 : i64} {
  func.func @_enc_reduce_kernel(%arg0: i32, %arg1: memref<8x128xf32, #tpu.memory_space<vmem>>, %arg2: memref<128x128xbf16, #tpu.memory_space<vmem>>, %arg3: memref<8x128xf32, #tpu.memory_space<vmem>>) attributes {dimension_semantics = [#tpu.dimension_semantics<arbitrary>], iteration_bounds = array<i64: 1>, scalar_prefetch = 0 : i64, scratch_operands = 0 : i64, tpu.core_type = #tpu.core_type<tc>, window_params = [{transform_indices = @transform_0, window_bounds = array<i64: 8, 128>}, {transform_indices = @transform_1, window_bounds = array<i64: 128, 128>}, {pipeline_mode = #tpu.pipeline_mode<synchronous>, transform_indices = @transform_2, window_bounds = array<i64: 8, 128>}]} {
    %c0_i32 = arith.constant 0 : i32
    %0 = arith.cmpi eq, %arg0, %c0_i32 : i32
    %1 = arith.extui %0 : i1 to i32
    %c0_i32_0 = arith.constant 0 : i32
    %2 = arith.cmpi ne, %1, %c0_i32_0 : i32
    scf.if %2 {
      %cst_8 = arith.constant 0.000000e+00 : f32
      %10 = vector.broadcast %cst_8 : f32 to vector<8x128xf32>
      %c0_9 = arith.constant 0 : index
      %c0_10 = arith.constant 0 : index
      %11 = vector.load %arg3[%c0_9, %c0_10] : memref<8x128xf32, #tpu.memory_space<vmem>>, vector<8x128xf32>
      tpu.vector_store %arg3[%c0_9, %c0_10], %10 {strides = array<i32>} : memref<8x128xf32, #tpu.memory_space<vmem>>, vector<8x128xf32>,
    } else {
    }
    %c0 = arith.constant 0 : index
    %c0_1 = arith.constant 0 : index
    %3 = vector.load %arg3[%c0, %c0_1] : memref<8x128xf32, #tpu.memory_space<vmem>>, vector<8x128xf32>
    %c0_2 = arith.constant 0 : index
    %c0_3 = arith.constant 0 : index
    %4 = vector.load %arg1[%c0_2, %c0_3] : memref<8x128xf32, #tpu.memory_space<vmem>>, vector<8x128xf32>
    %5 = arith.truncf %4 : vector<8x128xf32> to vector<8x128xbf16>
    %c0_4 = arith.constant 0 : index
    %c0_5 = arith.constant 0 : index
    %6 = vector.load %arg2[%c0_4, %c0_5] : memref<128x128xbf16, #tpu.memory_space<vmem>>, vector<128x128xbf16>
    %cst = arith.constant dense<0.000000e+00> : vector<8x128xf32>
    %7 = tpu.matmul %5, %6, %cst {dimension_numbers = #tpu.dot_dimension_numbers<[1], [0], [0], [1], [0, 0, 1, 1], [], []>} : vector<8x128xbf16>, vector<128x128xbf16>, vector<8x128xf32> -> vector<8x128xf32>
    %8 = arith.addf %3, %7 : vector<8x128xf32>
    %c0_6 = arith.constant 0 : index
    %c0_7 = arith.constant 0 : index
    %9 = vector.load %arg3[%c0_6, %c0_7] : memref<8x128xf32, #tpu.memory_space<vmem>>, vector<8x128xf32>
    tpu.vector_store %arg3[%c0_6, %c0_7], %8 {strides = array<i32>} : memref<8x128xf32, #tpu.memory_space<vmem>>, vector<8x128xf32>,
    return
  }
  func.func @transform_0(%arg0: i32) -> (i32, i32) {
    %c0_i32 = arith.constant 0 : i32
    %c0_i32_0 = arith.constant 0 : i32
    return %c0_i32, %arg0 : i32, i32
  }
  func.func @transform_1(%arg0: i32) -> (i32, i32) {
    %c0_i32 = arith.constant 0 : i32
    %c0_i32_0 = arith.constant 0 : i32
    return %arg0, %c0_i32 : i32, i32
  }
  func.func @transform_2(%arg0: i32) -> (i32, i32) {
    %c0_i32 = arith.constant 0 : i32
    %c0_i32_0 = arith.constant 0 : i32
    %c0_i32_1 = arith.constant 0 : i32
    return %c0_i32, %c0_i32_0 : i32, i32
  }
}

module attributes {stable_mosaic.version = 11 : i64} {
  func.func @_enc_tail_kernel(%arg0: memref<8x128xf32, #tpu.memory_space<vmem>>, %arg1: memref<1x128xf32, #tpu.memory_space<vmem>>, %arg2: memref<128x128xf32, #tpu.memory_space<vmem>>, %arg3: memref<1x128xf32, #tpu.memory_space<vmem>>, %arg4: memref<1x128xf32, #tpu.memory_space<vmem>>, %arg5: memref<1x128xf32, #tpu.memory_space<vmem>>, %arg6: memref<128x128xf32, #tpu.memory_space<vmem>>, %arg7: memref<1x128xf32, #tpu.memory_space<vmem>>, %arg8: memref<1x128xf32, #tpu.memory_space<vmem>>, %arg9: memref<1x128xf32, #tpu.memory_space<vmem>>, %arg10: memref<8x128xf32, #tpu.memory_space<vmem>>, %arg11: memref<8x128xf32, #tpu.memory_space<vmem>>) attributes {dimension_semantics = [], scalar_prefetch = 0 : i64, scratch_operands = 0 : i64, tpu.core_type = #tpu.core_type<tc>} {
    %c0 = arith.constant 0 : index
    %c0_0 = arith.constant 0 : index
    %0 = vector.load %arg0[%c0, %c0_0] : memref<8x128xf32, #tpu.memory_space<vmem>>, vector<8x128xf32>
    %c0_1 = arith.constant 0 : index
    %c0_2 = arith.constant 0 : index
    %1 = vector.load %arg1[%c0_1, %c0_2] : memref<1x128xf32, #tpu.memory_space<vmem>>, vector<1x128xf32>
    %2 = vector.broadcast %1 : vector<1x128xf32> to vector<8x128xf32>
    %3 = arith.addf %0, %2 : vector<8x128xf32>
    %cst = arith.constant 0.000000e+00 : f32
    %4 = vector.broadcast %cst : f32 to vector<8x128xf32>
    %5 = arith.maximumf %3, %4 : vector<8x128xf32>
    %c0_3 = arith.constant 0 : index
    %c0_4 = arith.constant 0 : index
    %6 = vector.load %arg2[%c0_3, %c0_4] : memref<128x128xf32, #tpu.memory_space<vmem>>, vector<128x128xf32>
    %cst_5 = arith.constant dense<0.000000e+00> : vector<8x128xf32>
    %7 = tpu.matmul %5, %6, %cst_5 {dimension_numbers = #tpu.dot_dimension_numbers<[1], [0], [0], [1], [0, 0, 1, 1], [], []>} : vector<8x128xf32>, vector<128x128xf32>, vector<8x128xf32> -> vector<8x128xf32>
    %c0_6 = arith.constant 0 : index
    %c0_7 = arith.constant 0 : index
    %8 = vector.load %arg3[%c0_6, %c0_7] : memref<1x128xf32, #tpu.memory_space<vmem>>, vector<1x128xf32>
    %9 = vector.broadcast %8 : vector<1x128xf32> to vector<8x128xf32>
    %10 = arith.addf %7, %9 : vector<8x128xf32>
    %c0_8 = arith.constant 0 : index
    %c0_9 = arith.constant 0 : index
    %11 = vector.load %arg4[%c0_8, %c0_9] : memref<1x128xf32, #tpu.memory_space<vmem>>, vector<1x128xf32>
    %c0_10 = arith.constant 0 : index
    %c0_11 = arith.constant 0 : index
    %12 = vector.load %arg5[%c0_10, %c0_11] : memref<1x128xf32, #tpu.memory_space<vmem>>, vector<1x128xf32>
    %cst_12 = arith.constant dense<0.000000e+00> : vector<128xf32>
    %13 = vector.multi_reduction <add>, %10, %cst_12 [0] : vector<8x128xf32> to vector<128xf32>
    %14 = vector.shape_cast %13 : vector<128xf32> to vector<1x128xf32>
    %cst_13 = arith.constant 1.250000e-01 : f32
    %15 = vector.broadcast %cst_13 : f32 to vector<1x128xf32>
    %16 = arith.mulf %14, %15 : vector<1x128xf32>
    %17 = vector.broadcast %16 : vector<1x128xf32> to vector<8x128xf32>
    %18 = arith.subf %10, %17 : vector<8x128xf32>
    %19 = arith.mulf %18, %18 : vector<8x128xf32>
    %cst_14 = arith.constant dense<0.000000e+00> : vector<128xf32>
    %20 = vector.multi_reduction <add>, %19, %cst_14 [0] : vector<8x128xf32> to vector<128xf32>
    %21 = vector.shape_cast %20 : vector<128xf32> to vector<1x128xf32>
    %cst_15 = arith.constant 1.250000e-01 : f32
    %22 = vector.broadcast %cst_15 : f32 to vector<1x128xf32>
    %23 = arith.mulf %21, %22 : vector<1x128xf32>
    %cst_16 = arith.constant 9.99999974E-6 : f32
    %24 = vector.broadcast %cst_16 : f32 to vector<1x128xf32>
    %25 = arith.addf %23, %24 : vector<1x128xf32>
    %26 = math.rsqrt %25 : vector<1x128xf32>
    %27 = arith.mulf %11, %26 : vector<1x128xf32>
    %28 = vector.broadcast %27 : vector<1x128xf32> to vector<8x128xf32>
    %29 = arith.mulf %18, %28 : vector<8x128xf32>
    %30 = vector.broadcast %12 : vector<1x128xf32> to vector<8x128xf32>
    %31 = arith.addf %29, %30 : vector<8x128xf32>
    %cst_17 = arith.constant 0.000000e+00 : f32
    %32 = vector.broadcast %cst_17 : f32 to vector<8x128xf32>
    %33 = arith.maximumf %31, %32 : vector<8x128xf32>
    %c0_18 = arith.constant 0 : index
    %c0_19 = arith.constant 0 : index
    %34 = vector.load %arg6[%c0_18, %c0_19] : memref<128x128xf32, #tpu.memory_space<vmem>>, vector<128x128xf32>
    %cst_20 = arith.constant dense<0.000000e+00> : vector<8x128xf32>
    %35 = tpu.matmul %33, %34, %cst_20 {dimension_numbers = #tpu.dot_dimension_numbers<[1], [0], [0], [1], [0, 0, 1, 1], [], []>} : vector<8x128xf32>, vector<128x128xf32>, vector<8x128xf32> -> vector<8x128xf32>
    %c0_21 = arith.constant 0 : index
    %c0_22 = arith.constant 0 : index
    %36 = vector.load %arg7[%c0_21, %c0_22] : memref<1x128xf32, #tpu.memory_space<vmem>>, vector<1x128xf32>
    %37 = vector.broadcast %36 : vector<1x128xf32> to vector<8x128xf32>
    %38 = arith.addf %35, %37 : vector<8x128xf32>
    %c0_23 = arith.constant 0 : index
    %c0_24 = arith.constant 0 : index
    %39 = vector.load %arg8[%c0_23, %c0_24] : memref<1x128xf32, #tpu.memory_space<vmem>>, vector<1x128xf32>
    %c0_25 = arith.constant 0 : index
    %c0_26 = arith.constant 0 : index
    %40 = vector.load %arg9[%c0_25, %c0_26] : memref<1x128xf32, #tpu.memory_space<vmem>>, vector<1x128xf32>
    %cst_27 = arith.constant dense<0.000000e+00> : vector<128xf32>
    %41 = vector.multi_reduction <add>, %38, %cst_27 [0] : vector<8x128xf32> to vector<128xf32>
    %42 = vector.shape_cast %41 : vector<128xf32> to vector<1x128xf32>
    %cst_28 = arith.constant 1.250000e-01 : f32
    %43 = vector.broadcast %cst_28 : f32 to vector<1x128xf32>
    %44 = arith.mulf %42, %43 : vector<1x128xf32>
    %45 = vector.broadcast %44 : vector<1x128xf32> to vector<8x128xf32>
    %46 = arith.subf %38, %45 : vector<8x128xf32>
    %47 = arith.mulf %46, %46 : vector<8x128xf32>
    %cst_29 = arith.constant dense<0.000000e+00> : vector<128xf32>
    %48 = vector.multi_reduction <add>, %47, %cst_29 [0] : vector<8x128xf32> to vector<128xf32>
    %49 = vector.shape_cast %48 : vector<128xf32> to vector<1x128xf32>
    %cst_30 = arith.constant 1.250000e-01 : f32
    %50 = vector.broadcast %cst_30 : f32 to vector<1x128xf32>
    %51 = arith.mulf %49, %50 : vector<1x128xf32>
    %cst_31 = arith.constant 9.99999974E-6 : f32
    %52 = vector.broadcast %cst_31 : f32 to vector<1x128xf32>
    %53 = arith.addf %51, %52 : vector<1x128xf32>
    %54 = math.rsqrt %53 : vector<1x128xf32>
    %55 = arith.mulf %39, %54 : vector<1x128xf32>
    %56 = vector.broadcast %55 : vector<1x128xf32> to vector<8x128xf32>
    %57 = arith.mulf %46, %56 : vector<8x128xf32>
    %58 = vector.broadcast %40 : vector<1x128xf32> to vector<8x128xf32>
    %59 = arith.addf %57, %58 : vector<8x128xf32>
    %cst_32 = arith.constant 2.500000e-01 : f32
    %60 = vector.broadcast %cst_32 : f32 to vector<8x128xf32>
    %61 = arith.mulf %59, %60 : vector<8x128xf32>
    %62 = math.exp %61 : vector<8x128xf32>
    %cst_33 = arith.constant 0.000000e+00 : f32
    %cst_34 = arith.constant 3.000000e+01 : f32
    %63 = vector.broadcast %cst_33 : f32 to vector<8x128xf32>
    %64 = arith.maximumf %63, %62 : vector<8x128xf32>
    %65 = vector.broadcast %cst_34 : f32 to vector<8x128xf32>
    %66 = arith.minimumf %65, %64 : vector<8x128xf32>
    %c0_35 = arith.constant 0 : index
    %c0_36 = arith.constant 0 : index
    %67 = vector.load %arg10[%c0_35, %c0_36] : memref<8x128xf32, #tpu.memory_space<vmem>>, vector<8x128xf32>
    tpu.vector_store %arg10[%c0_35, %c0_36], %66 {strides = array<i32>} : memref<8x128xf32, #tpu.memory_space<vmem>>, vector<8x128xf32>,
    %cst_37 = arith.constant 1.000000e+10 : f32
    %68 = vector.broadcast %cst_37 : f32 to vector<8x128xf32>
    %69 = arith.mulf %68, %66 : vector<8x128xf32>
    %70 = math.floor %69 : vector<8x128xf32>
    %cst_38 = arith.constant 1.000000e+10 : f32
    %71 = vector.broadcast %cst_38 : f32 to vector<8x128xf32>
    %72 = arith.divf %70, %71 : vector<8x128xf32>
    %c0_39 = arith.constant 0 : index
    %c0_40 = arith.constant 0 : index
    %73 = vector.load %arg11[%c0_39, %c0_40] : memref<8x128xf32, #tpu.memory_space<vmem>>, vector<8x128xf32>
    tpu.vector_store %arg11[%c0_39, %c0_40], %72 {strides = array<i32>} : memref<8x128xf32, #tpu.memory_space<vmem>>, vector<8x128xf32>,
    return
  }
}

module attributes {stable_mosaic.version = 11 : i64} {
  func.func @_decode_stats_kernel(%arg0: i32, %arg1: memref<8x128xf32, #tpu.memory_space<vmem>>, %arg2: memref<8x128xf32, #tpu.memory_space<vmem>>, %arg3: memref<8x128xf32, #tpu.memory_space<vmem>>, %arg4: memref<8x128xf32, #tpu.memory_space<vmem>>, %arg5: memref<128x128xbf16, #tpu.memory_space<vmem>>, %arg6: memref<8x128xf32, #tpu.memory_space<vmem>>, %arg7: memref<8x128xf32, #tpu.memory_space<vmem>>, %arg8: memref<8x1xf32, #tpu.memory_space<vmem>>, %arg9: memref<1x1xf32, #tpu.memory_space<vmem>>, %arg10: memref<1x1xf32, #tpu.memory_space<vmem>>, %arg11: memref<8x128xf32, #tpu.memory_space<vmem>>, %arg12: memref<8x1xf32, #tpu.memory_space<vmem>>, %arg13: memref<8x1xf32, #tpu.memory_space<vmem>>, %arg14: memref<8x1xf32, #tpu.memory_space<vmem>>, %arg15: memref<8x1xf32, #tpu.memory_space<vmem>>) attributes {dimension_semantics = [#tpu.dimension_semantics<arbitrary>], iteration_bounds = array<i64: 1>, scalar_prefetch = 0 : i64, scratch_operands = 5 : i64, tpu.core_type = #tpu.core_type<tc>, window_params = [{transform_indices = @transform_0, window_bounds = array<i64: 8, 128>}, {pipeline_mode = #tpu.pipeline_mode<synchronous>, transform_indices = @transform_1, window_bounds = array<i64: 8, 128>}, {pipeline_mode = #tpu.pipeline_mode<synchronous>, transform_indices = @transform_2, window_bounds = array<i64: 8, 128>}, {pipeline_mode = #tpu.pipeline_mode<synchronous>, transform_indices = @transform_3, window_bounds = array<i64: 8, 128>}, {transform_indices = @transform_4, window_bounds = array<i64: 128, 128>}, {transform_indices = @transform_5, window_bounds = array<i64: 8, 128>}, {transform_indices = @transform_6, window_bounds = array<i64: 8, 128>}, {pipeline_mode = #tpu.pipeline_mode<synchronous>, transform_indices = @transform_7, window_bounds = array<i64: 8, 1>}, {pipeline_mode = #tpu.pipeline_mode<synchronous>, transform_indices = @transform_8, window_bounds = array<i64: 1, 1>}, {pipeline_mode = #tpu.pipeline_mode<synchronous>, transform_indices = @transform_9, window_bounds = array<i64: 1, 1>}]} {
    %0 = tpu.iota {dimensions = array<i32: 1>} : vector<1x128xi32>
    %c8_i32 = arith.constant 8 : i32
    %1 = vector.broadcast %c8_i32 : i32 to vector<1x128xi32>
    %2 = arith.cmpi slt, %0, %1 : vector<1x128xi32>
    %c0_i32 = arith.constant 0 : i32
    %3 = arith.cmpi eq, %arg0, %c0_i32 : i32
    %4 = arith.extui %3 : i1 to i32
    %c0_i32_0 = arith.constant 0 : i32
    %5 = arith.cmpi ne, %4, %c0_i32_0 : i32
    scf.if %5 {
      %cst_41 = arith.constant -1.000000e+30 : f32
      %80 = vector.broadcast %cst_41 : f32 to vector<8x1xf32>
      %c0_42 = arith.constant 0 : index
      %c0_43 = arith.constant 0 : index
      %81 = vector.load %arg12[%c0_42, %c0_43] : memref<8x1xf32, #tpu.memory_space<vmem>>, vector<8x1xf32>
      tpu.vector_store %arg12[%c0_42, %c0_43], %80 {strides = array<i32>} : memref<8x1xf32, #tpu.memory_space<vmem>>, vector<8x1xf32>,
      %cst_44 = arith.constant 0.000000e+00 : f32
      %82 = vector.broadcast %cst_44 : f32 to vector<8x1xf32>
      %c0_45 = arith.constant 0 : index
      %c0_46 = arith.constant 0 : index
      %83 = vector.load %arg13[%c0_45, %c0_46] : memref<8x1xf32, #tpu.memory_space<vmem>>, vector<8x1xf32>
      tpu.vector_store %arg13[%c0_45, %c0_46], %82 {strides = array<i32>} : memref<8x1xf32, #tpu.memory_space<vmem>>, vector<8x1xf32>,
      %cst_47 = arith.constant 0.000000e+00 : f32
      %84 = vector.broadcast %cst_47 : f32 to vector<8x1xf32>
      %c0_48 = arith.constant 0 : index
      %c0_49 = arith.constant 0 : index
      %85 = vector.load %arg14[%c0_48, %c0_49] : memref<8x1xf32, #tpu.memory_space<vmem>>, vector<8x1xf32>
      tpu.vector_store %arg14[%c0_48, %c0_49], %84 {strides = array<i32>} : memref<8x1xf32, #tpu.memory_space<vmem>>, vector<8x1xf32>,
      %cst_50 = arith.constant 0.000000e+00 : f32
      %86 = vector.broadcast %cst_50 : f32 to vector<8x1xf32>
      %c0_51 = arith.constant 0 : index
      %c0_52 = arith.constant 0 : index
      %87 = vector.load %arg15[%c0_51, %c0_52] : memref<8x1xf32, #tpu.memory_space<vmem>>, vector<8x1xf32>
      tpu.vector_store %arg15[%c0_51, %c0_52], %86 {strides = array<i32>} : memref<8x1xf32, #tpu.memory_space<vmem>>, vector<8x1xf32>,
      %c0_53 = arith.constant 0 : index
      %c0_54 = arith.constant 0 : index
      %88 = vector.load %arg4[%c0_53, %c0_54] : memref<8x128xf32, #tpu.memory_space<vmem>>, vector<8x128xf32>
      %c0_55 = arith.constant 0 : index
      %c0_56 = arith.constant 0 : index
      %89 = vector.load %arg2[%c0_55, %c0_56] : memref<8x128xf32, #tpu.memory_space<vmem>>, vector<8x128xf32>
      %c0_57 = arith.constant 0 : index
      %c0_58 = arith.constant 0 : index
      %90 = vector.load %arg3[%c0_57, %c0_58] : memref<8x128xf32, #tpu.memory_space<vmem>>, vector<8x128xf32>
      %91 = arith.subf %89, %90 : vector<8x128xf32>
      %cst_59 = arith.constant 0.00999999977 : f32
      %92 = vector.broadcast %cst_59 : f32 to vector<8x128xf32>
      %93 = arith.mulf %91, %92 : vector<8x128xf32>
      %94 = arith.addf %88, %93 : vector<8x128xf32>
      %cst_60 = arith.constant 0.000000e+00 : f32
      %95 = vector.shape_cast %2 : vector<1x128xi1> to vector<1x128xi1>
      %96 = vector.broadcast %95 : vector<1x128xi1> to vector<8x128xi1>
      %97 = vector.broadcast %cst_60 : f32 to vector<8x128xf32>
      %98 = arith.select %96, %94, %97 : vector<8x128xi1>, vector<8x128xf32>
      %cst_61 = arith.constant dense<0.000000e+00> : vector<8xf32>
      %99 = vector.multi_reduction <add>, %98, %cst_61 [1] : vector<8x128xf32> to vector<8xf32>
      %100 = vector.shape_cast %99 : vector<8xf32> to vector<8x1xf32>
      %101 = vector.broadcast %100 : vector<8x1xf32> to vector<8x128xf32>
      %102 = arith.divf %98, %101 : vector<8x128xf32>
      %c0_62 = arith.constant 0 : index
      %c0_63 = arith.constant 0 : index
      %103 = vector.load %arg11[%c0_62, %c0_63] : memref<8x128xf32, #tpu.memory_space<vmem>>, vector<8x128xf32>
      tpu.vector_store %arg11[%c0_62, %c0_63], %102 {strides = array<i32>} : memref<8x128xf32, #tpu.memory_space<vmem>>, vector<8x128xf32>,
    } else {
    }
    %c0 = arith.constant 0 : index
    %c0_1 = arith.constant 0 : index
    %6 = vector.load %arg6[%c0, %c0_1] : memref<8x128xf32, #tpu.memory_space<vmem>>, vector<1x128xf32>
    %c1 = arith.constant 1 : index
    %c0_2 = arith.constant 0 : index
    %7 = vector.load %arg6[%c1, %c0_2] : memref<8x128xf32, #tpu.memory_space<vmem>>, vector<1x128xf32>
    %c2 = arith.constant 2 : index
    %c0_3 = arith.constant 0 : index
    %8 = vector.load %arg6[%c2, %c0_3] : memref<8x128xf32, #tpu.memory_space<vmem>>, vector<1x128xf32>
    %c0_4 = arith.constant 0 : index
    %c0_5 = arith.constant 0 : index
    %9 = vector.load %arg11[%c0_4, %c0_5] : memref<8x128xf32, #tpu.memory_space<vmem>>, vector<8x128xf32>
    %10 = arith.truncf %9 : vector<8x128xf32> to vector<8x128xbf16>
    %c0_6 = arith.constant 0 : index
    %c0_7 = arith.constant 0 : index
    %11 = vector.load %arg5[%c0_6, %c0_7] : memref<128x128xbf16, #tpu.memory_space<vmem>>, vector<128x128xbf16>
    %cst = arith.constant dense<0.000000e+00> : vector<8x128xf32>
    %12 = tpu.matmul %10, %11, %cst {dimension_numbers = #tpu.dot_dimension_numbers<[1], [0], [0], [1], [0, 0, 1, 1], [], []>} : vector<8x128xbf16>, vector<128x128xbf16>, vector<8x128xf32> -> vector<8x128xf32>
    %13 = vector.broadcast %6 : vector<1x128xf32> to vector<8x128xf32>
    %14 = arith.addf %12, %13 : vector<8x128xf32>
    %cst_8 = arith.constant dense<0.000000e+00> : vector<128xf32>
    %15 = vector.multi_reduction <add>, %14, %cst_8 [0] : vector<8x128xf32> to vector<128xf32>
    %16 = vector.shape_cast %15 : vector<128xf32> to vector<1x128xf32>
    %cst_9 = arith.constant 1.250000e-01 : f32
    %17 = vector.broadcast %cst_9 : f32 to vector<1x128xf32>
    %18 = arith.mulf %16, %17 : vector<1x128xf32>
    %19 = vector.broadcast %18 : vector<1x128xf32> to vector<8x128xf32>
    %20 = arith.subf %14, %19 : vector<8x128xf32>
    %21 = arith.mulf %20, %20 : vector<8x128xf32>
    %cst_10 = arith.constant dense<0.000000e+00> : vector<128xf32>
    %22 = vector.multi_reduction <add>, %21, %cst_10 [0] : vector<8x128xf32> to vector<128xf32>
    %23 = vector.shape_cast %22 : vector<128xf32> to vector<1x128xf32>
    %cst_11 = arith.constant 1.250000e-01 : f32
    %24 = vector.broadcast %cst_11 : f32 to vector<1x128xf32>
    %25 = arith.mulf %23, %24 : vector<1x128xf32>
    %cst_12 = arith.constant 9.99999974E-6 : f32
    %26 = vector.broadcast %cst_12 : f32 to vector<1x128xf32>
    %27 = arith.addf %25, %26 : vector<1x128xf32>
    %28 = math.rsqrt %27 : vector<1x128xf32>
    %29 = arith.mulf %7, %28 : vector<1x128xf32>
    %30 = vector.broadcast %29 : vector<1x128xf32> to vector<8x128xf32>
    %31 = arith.mulf %20, %30 : vector<8x128xf32>
    %32 = vector.broadcast %8 : vector<1x128xf32> to vector<8x128xf32>
    %33 = arith.addf %31, %32 : vector<8x128xf32>
    %c0_13 = arith.constant 0 : index
    %c0_14 = arith.constant 0 : index
    %34 = vector.load %arg7[%c0_13, %c0_14] : memref<8x128xf32, #tpu.memory_space<vmem>>, vector<8x128xf32>
    tpu.vector_store %arg7[%c0_13, %c0_14], %33 {strides = array<i32>} : memref<8x128xf32, #tpu.memory_space<vmem>>, vector<8x128xf32>,
    %c128_i32 = arith.constant 128 : i32
    %35 = arith.muli %arg0, %c128_i32 : i32
    %36 = tpu.iota {dimensions = array<i32: 1>} : vector<1x128xi32>
    %37 = vector.broadcast %35 : i32 to vector<1x128xi32>
    %38 = arith.addi %37, %36 : vector<1x128xi32>
    %c64_i32 = arith.constant 64 : i32
    %39 = vector.broadcast %c64_i32 : i32 to vector<1x128xi32>
    %40 = arith.cmpi slt, %38, %39 : vector<1x128xi32>
    %cst_15 = arith.constant -1.000000e+30 : f32
    %41 = vector.shape_cast %40 : vector<1x128xi1> to vector<1x128xi1>
    %42 = vector.broadcast %41 : vector<1x128xi1> to vector<8x128xi1>
    %43 = vector.broadcast %cst_15 : f32 to vector<8x128xf32>
    %44 = arith.select %42, %33, %43 : vector<8x128xi1>, vector<8x128xf32>
    %c0_16 = arith.constant 0 : index
    %c0_17 = arith.constant 0 : index
    %45 = vector.load %arg12[%c0_16, %c0_17] : memref<8x1xf32, #tpu.memory_space<vmem>>, vector<8x1xf32>
    %cst_18 = arith.constant dense<0xFF800000> : vector<8xf32>
    %46 = vector.multi_reduction <maximumf>, %44, %cst_18 [1] : vector<8x128xf32> to vector<8xf32>
    %47 = vector.shape_cast %46 : vector<8xf32> to vector<8x1xf32>
    %48 = arith.maximumf %45, %47 : vector<8x1xf32>
    %49 = vector.broadcast %48 : vector<8x1xf32> to vector<8x128xf32>
    %50 = arith.subf %33, %49 : vector<8x128xf32>
    %51 = math.exp %50 : vector<8x128xf32>
    %cst_19 = arith.constant 0.000000e+00 : f32
    %52 = vector.shape_cast %40 : vector<1x128xi1> to vector<1x128xi1>
    %53 = vector.broadcast %52 : vector<1x128xi1> to vector<8x128xi1>
    %54 = vector.broadcast %cst_19 : f32 to vector<8x128xf32>
    %55 = arith.select %53, %51, %54 : vector<8x128xi1>, vector<8x128xf32>
    %c0_20 = arith.constant 0 : index
    %c0_21 = arith.constant 0 : index
    %56 = vector.load %arg13[%c0_20, %c0_21] : memref<8x1xf32, #tpu.memory_space<vmem>>, vector<8x1xf32>
    %57 = arith.subf %45, %48 : vector<8x1xf32>
    %58 = math.exp %57 : vector<8x1xf32>
    %59 = arith.mulf %56, %58 : vector<8x1xf32>
    %cst_22 = arith.constant dense<0.000000e+00> : vector<8xf32>
    %60 = vector.multi_reduction <add>, %55, %cst_22 [1] : vector<8x128xf32> to vector<8xf32>
    %61 = vector.shape_cast %60 : vector<8xf32> to vector<8x1xf32>
    %62 = arith.addf %59, %61 : vector<8x1xf32>
    %c0_23 = arith.constant 0 : index
    %c0_24 = arith.constant 0 : index
    %63 = vector.load %arg13[%c0_23, %c0_24] : memref<8x1xf32, #tpu.memory_space<vmem>>, vector<8x1xf32>
    tpu.vector_store %arg13[%c0_23, %c0_24], %62 {strides = array<i32>} : memref<8x1xf32, #tpu.memory_space<vmem>>, vector<8x1xf32>,
    %c0_25 = arith.constant 0 : index
    %c0_26 = arith.constant 0 : index
    %64 = vector.load %arg12[%c0_25, %c0_26] : memref<8x1xf32, #tpu.memory_space<vmem>>, vector<8x1xf32>
    tpu.vector_store %arg12[%c0_25, %c0_26], %48 {strides = array<i32>} : memref<8x1xf32, #tpu.memory_space<vmem>>, vector<8x1xf32>,
    %c0_27 = arith.constant 0 : index
    %c0_28 = arith.constant 0 : index
    %65 = vector.load %arg1[%c0_27, %c0_28] : memref<8x128xf32, #tpu.memory_space<vmem>>, vector<8x128xf32>
    %c0_29 = arith.constant 0 : index
    %c0_30 = arith.constant 0 : index
    %66 = vector.load %arg14[%c0_29, %c0_30] : memref<8x1xf32, #tpu.memory_space<vmem>>, vector<8x1xf32>
    %67 = arith.mulf %65, %33 : vector<8x128xf32>
    %cst_31 = arith.constant dense<0.000000e+00> : vector<8xf32>
    %68 = vector.multi_reduction <add>, %67, %cst_31 [1] : vector<8x128xf32> to vector<8xf32>
    %69 = vector.shape_cast %68 : vector<8xf32> to vector<8x1xf32>
    %70 = arith.addf %66, %69 : vector<8x1xf32>
    %c0_32 = arith.constant 0 : index
    %c0_33 = arith.constant 0 : index
    %71 = vector.load %arg14[%c0_32, %c0_33] : memref<8x1xf32, #tpu.memory_space<vmem>>, vector<8x1xf32>
    tpu.vector_store %arg14[%c0_32, %c0_33], %70 {strides = array<i32>} : memref<8x1xf32, #tpu.memory_space<vmem>>, vector<8x1xf32>,
    %c0_34 = arith.constant 0 : index
    %c0_35 = arith.constant 0 : index
    %72 = vector.load %arg15[%c0_34, %c0_35] : memref<8x1xf32, #tpu.memory_space<vmem>>, vector<8x1xf32>
    %cst_36 = arith.constant dense<0.000000e+00> : vector<8xf32>
    %73 = vector.multi_reduction <add>, %65, %cst_36 [1] : vector<8x128xf32> to vector<8xf32>
    %74 = vector.shape_cast %73 : vector<8xf32> to vector<8x1xf32>
    %75 = arith.addf %72, %74 : vector<8x1xf32>
    %c0_37 = arith.constant 0 : index
    %c0_38 = arith.constant 0 : index
    %76 = vector.load %arg15[%c0_37, %c0_38] : memref<8x1xf32, #tpu.memory_space<vmem>>, vector<8x1xf32>
    tpu.vector_store %arg15[%c0_37, %c0_38], %75 {strides = array<i32>} : memref<8x1xf32, #tpu.memory_space<vmem>>, vector<8x1xf32>,
    %c0_i32_39 = arith.constant 0 : i32
    %77 = arith.cmpi eq, %arg0, %c0_i32_39 : i32
    %78 = arith.extui %77 : i1 to i32
    %c0_i32_40 = arith.constant 0 : i32
    %79 = arith.cmpi ne, %78, %c0_i32_40 : i32
    scf.if %79 {
      %c0_41 = arith.constant 0 : index
      %c0_42 = arith.constant 0 : index
      %80 = vector.load %arg12[%c0_41, %c0_42] : memref<8x1xf32, #tpu.memory_space<vmem>>, vector<8x1xf32>
      %c0_43 = arith.constant 0 : index
      %c0_44 = arith.constant 0 : index
      %81 = vector.load %arg13[%c0_43, %c0_44] : memref<8x1xf32, #tpu.memory_space<vmem>>, vector<8x1xf32>
      %82 = math.log %81 : vector<8x1xf32>
      %83 = arith.addf %80, %82 : vector<8x1xf32>
      %c0_45 = arith.constant 0 : index
      %c0_46 = arith.constant 0 : index
      %84 = vector.load %arg8[%c0_45, %c0_46] : memref<8x1xf32, #tpu.memory_space<vmem>>, vector<8x1xf32>
      tpu.vector_store %arg8[%c0_45, %c0_46], %83 {strides = array<i32>} : memref<8x1xf32, #tpu.memory_space<vmem>>, vector<8x1xf32>,
      %c0_47 = arith.constant 0 : index
      %c0_48 = arith.constant 0 : index
      %85 = vector.load %arg2[%c0_47, %c0_48] : memref<8x128xf32, #tpu.memory_space<vmem>>, vector<8x128xf32>
      %cst_49 = arith.constant 1.000000e+00 : f32
      %86 = vector.broadcast %cst_49 : f32 to vector<8x128xf32>
      %87 = arith.subf %85, %86 : vector<8x128xf32>
      %cst_50 = arith.constant 1.000000e+00 : f32
      %88 = vector.broadcast %cst_50 : f32 to vector<8x128xf32>
      %cst_51 = arith.constant 1.000000e+00 : f32
      %89 = vector.broadcast %cst_51 : f32 to vector<8x128xf32>
      %cst_52 = arith.constant 1.000000e+00 : f32
      %90 = vector.broadcast %cst_52 : f32 to vector<8x128xf32>
      %91 = arith.addf %87, %90 : vector<8x128xf32>
      %92 = arith.mulf %88, %91 : vector<8x128xf32>
      %cst_53 = arith.constant 676.520386 : f32
      %93 = vector.broadcast %cst_53 : f32 to vector<8x128xf32>
      %94 = arith.mulf %93, %89 : vector<8x128xf32>
      %95 = arith.addf %92, %94 : vector<8x128xf32>
      %96 = arith.mulf %89, %91 : vector<8x128xf32>
      %cst_54 = arith.constant 2.000000e+00 : f32
      %97 = vector.broadcast %cst_54 : f32 to vector<8x128xf32>
      %98 = arith.addf %87, %97 : vector<8x128xf32>
      %99 = arith.mulf %95, %98 : vector<8x128xf32>
      %cst_55 = arith.constant -1259.13916 : f32
      %100 = vector.broadcast %cst_55 : f32 to vector<8x128xf32>
      %101 = arith.mulf %100, %96 : vector<8x128xf32>
      %102 = arith.addf %99, %101 : vector<8x128xf32>
      %103 = arith.mulf %96, %98 : vector<8x128xf32>
      %cst_56 = arith.constant 3.000000e+00 : f32
      %104 = vector.broadcast %cst_56 : f32 to vector<8x128xf32>
      %105 = arith.addf %87, %104 : vector<8x128xf32>
      %106 = arith.mulf %102, %105 : vector<8x128xf32>
      %cst_57 = arith.constant 771.323425 : f32
      %107 = vector.broadcast %cst_57 : f32 to vector<8x128xf32>
      %108 = arith.mulf %107, %103 : vector<8x128xf32>
      %109 = arith.addf %106, %108 : vector<8x128xf32>
      %110 = arith.mulf %103, %105 : vector<8x128xf32>
      %cst_58 = arith.constant 4.000000e+00 : f32
      %111 = vector.broadcast %cst_58 : f32 to vector<8x128xf32>
      %112 = arith.addf %87, %111 : vector<8x128xf32>
      %113 = arith.mulf %109, %112 : vector<8x128xf32>
      %cst_59 = arith.constant -176.615036 : f32
      %114 = vector.broadcast %cst_59 : f32 to vector<8x128xf32>
      %115 = arith.mulf %114, %110 : vector<8x128xf32>
      %116 = arith.addf %113, %115 : vector<8x128xf32>
      %117 = arith.mulf %110, %112 : vector<8x128xf32>
      %cst_60 = arith.constant 0.000000e+00 : f32
      %118 = vector.broadcast %cst_60 : f32 to vector<8x128xf32>
      %cst_61 = arith.constant 1.000000e+00 : f32
      %119 = vector.broadcast %cst_61 : f32 to vector<8x128xf32>
      %cst_62 = arith.constant 5.000000e+00 : f32
      %120 = vector.broadcast %cst_62 : f32 to vector<8x128xf32>
      %121 = arith.addf %87, %120 : vector<8x128xf32>
      %122 = arith.mulf %118, %121 : vector<8x128xf32>
      %cst_63 = arith.constant 12.5073433 : f32
      %123 = vector.broadcast %cst_63 : f32 to vector<8x128xf32>
      %124 = arith.mulf %123, %119 : vector<8x128xf32>
      %125 = arith.addf %122, %124 : vector<8x128xf32>
      %126 = arith.mulf %119, %121 : vector<8x128xf32>
      %cst_64 = arith.constant 6.000000e+00 : f32
      %127 = vector.broadcast %cst_64 : f32 to vector<8x128xf32>
      %128 = arith.addf %87, %127 : vector<8x128xf32>
      %129 = arith.mulf %125, %128 : vector<8x128xf32>
      %cst_65 = arith.constant -0.138571098 : f32
      %130 = vector.broadcast %cst_65 : f32 to vector<8x128xf32>
      %131 = arith.mulf %130, %126 : vector<8x128xf32>
      %132 = arith.addf %129, %131 : vector<8x128xf32>
      %133 = arith.mulf %126, %128 : vector<8x128xf32>
      %cst_66 = arith.constant 7.000000e+00 : f32
      %134 = vector.broadcast %cst_66 : f32 to vector<8x128xf32>
      %135 = arith.addf %87, %134 : vector<8x128xf32>
      %136 = arith.mulf %132, %135 : vector<8x128xf32>
      %cst_67 = arith.constant 9.98436917E-6 : f32
      %137 = vector.broadcast %cst_67 : f32 to vector<8x128xf32>
      %138 = arith.mulf %137, %133 : vector<8x128xf32>
      %139 = arith.addf %136, %138 : vector<8x128xf32>
      %140 = arith.mulf %133, %135 : vector<8x128xf32>
      %cst_68 = arith.constant 8.000000e+00 : f32
      %141 = vector.broadcast %cst_68 : f32 to vector<8x128xf32>
      %142 = arith.addf %87, %141 : vector<8x128xf32>
      %143 = arith.mulf %139, %142 : vector<8x128xf32>
      %cst_69 = arith.constant 1.50563267E-7 : f32
      %144 = vector.broadcast %cst_69 : f32 to vector<8x128xf32>
      %145 = arith.mulf %144, %140 : vector<8x128xf32>
      %146 = arith.addf %143, %145 : vector<8x128xf32>
      %147 = arith.mulf %140, %142 : vector<8x128xf32>
      %148 = arith.divf %116, %117 : vector<8x128xf32>
      %149 = arith.divf %146, %147 : vector<8x128xf32>
      %150 = arith.addf %148, %149 : vector<8x128xf32>
      %cst_70 = arith.constant 7.000000e+00 : f32
      %151 = vector.broadcast %cst_70 : f32 to vector<8x128xf32>
      %152 = arith.addf %87, %151 : vector<8x128xf32>
      %cst_71 = arith.constant 5.000000e-01 : f32
      %153 = vector.broadcast %cst_71 : f32 to vector<8x128xf32>
      %154 = arith.addf %152, %153 : vector<8x128xf32>
      %cst_72 = arith.constant 5.000000e-01 : f32
      %155 = vector.broadcast %cst_72 : f32 to vector<8x128xf32>
      %156 = arith.addf %87, %155 : vector<8x128xf32>
      %157 = math.log %154 : vector<8x128xf32>
      %158 = arith.mulf %156, %157 : vector<8x128xf32>
      %cst_73 = arith.constant 0.918938517 : f32
      %159 = vector.broadcast %cst_73 : f32 to vector<8x128xf32>
      %160 = arith.addf %159, %158 : vector<8x128xf32>
      %161 = arith.subf %160, %154 : vector<8x128xf32>
      %162 = math.log %150 : vector<8x128xf32>
      %163 = arith.addf %161, %162 : vector<8x128xf32>
      %cst_74 = arith.constant 1.000000e+00 : f32
      %164 = vector.broadcast %cst_74 : f32 to vector<8x128xf32>
      %165 = arith.subf %85, %164 : vector<8x128xf32>
      %cst_75 = arith.constant 0.000000e+00 : f32
      %166 = vector.broadcast %cst_75 : f32 to vector<8x128xf32>
      %cst_76 = arith.constant 1.000000e+00 : f32
      %167 = vector.broadcast %cst_76 : f32 to vector<8x128xf32>
      %cst_77 = arith.constant 0.000000e+00 : f32
      %168 = vector.broadcast %cst_77 : f32 to vector<8x128xf32>
      %169 = arith.addf %85, %168 : vector<8x128xf32>
      %170 = arith.mulf %166, %169 : vector<8x128xf32>
      %171 = arith.addf %170, %167 : vector<8x128xf32>
      %172 = arith.mulf %167, %169 : vector<8x128xf32>
      %cst_78 = arith.constant 1.000000e+00 : f32
      %173 = vector.broadcast %cst_78 : f32 to vector<8x128xf32>
      %174 = arith.addf %85, %173 : vector<8x128xf32>
      %175 = arith.mulf %171, %174 : vector<8x128xf32>
      %176 = arith.addf %175, %172 : vector<8x128xf32>
      %177 = arith.mulf %172, %174 : vector<8x128xf32>
      %cst_79 = arith.constant 2.000000e+00 : f32
      %178 = vector.broadcast %cst_79 : f32 to vector<8x128xf32>
      %179 = arith.addf %85, %178 : vector<8x128xf32>
      %180 = arith.mulf %176, %179 : vector<8x128xf32>
      %181 = arith.addf %180, %177 : vector<8x128xf32>
      %182 = arith.mulf %177, %179 : vector<8x128xf32>
      %cst_80 = arith.constant 3.000000e+00 : f32
      %183 = vector.broadcast %cst_80 : f32 to vector<8x128xf32>
      %184 = arith.addf %85, %183 : vector<8x128xf32>
      %185 = arith.mulf %181, %184 : vector<8x128xf32>
      %186 = arith.addf %185, %182 : vector<8x128xf32>
      %187 = arith.mulf %182, %184 : vector<8x128xf32>
      %cst_81 = arith.constant 4.000000e+00 : f32
      %188 = vector.broadcast %cst_81 : f32 to vector<8x128xf32>
      %189 = arith.addf %85, %188 : vector<8x128xf32>
      %190 = arith.mulf %186, %189 : vector<8x128xf32>
      %191 = arith.addf %190, %187 : vector<8x128xf32>
      %192 = arith.mulf %187, %189 : vector<8x128xf32>
      %cst_82 = arith.constant 5.000000e+00 : f32
      %193 = vector.broadcast %cst_82 : f32 to vector<8x128xf32>
      %194 = arith.addf %85, %193 : vector<8x128xf32>
      %195 = arith.mulf %191, %194 : vector<8x128xf32>
      %196 = arith.addf %195, %192 : vector<8x128xf32>
      %197 = arith.mulf %192, %194 : vector<8x128xf32>
      %198 = arith.divf %196, %197 : vector<8x128xf32>
      %cst_83 = arith.constant 6.000000e+00 : f32
      %199 = vector.broadcast %cst_83 : f32 to vector<8x128xf32>
      %200 = arith.addf %85, %199 : vector<8x128xf32>
      %cst_84 = arith.constant 1.000000e+00 : f32
      %201 = vector.broadcast %cst_84 : f32 to vector<8x128xf32>
      %202 = arith.divf %201, %200 : vector<8x128xf32>
      %203 = arith.mulf %202, %202 : vector<8x128xf32>
      %204 = math.log %200 : vector<8x128xf32>
      %cst_85 = arith.constant 5.000000e-01 : f32
      %205 = vector.broadcast %cst_85 : f32 to vector<8x128xf32>
      %206 = arith.mulf %205, %202 : vector<8x128xf32>
      %207 = arith.subf %204, %206 : vector<8x128xf32>
      %cst_86 = arith.constant 2.520000e+02 : f32
      %208 = vector.broadcast %cst_86 : f32 to vector<8x128xf32>
      %209 = arith.divf %203, %208 : vector<8x128xf32>
      %cst_87 = arith.constant 0.00833333377 : f32
      %210 = vector.broadcast %cst_87 : f32 to vector<8x128xf32>
      %211 = arith.subf %210, %209 : vector<8x128xf32>
      %212 = arith.mulf %203, %211 : vector<8x128xf32>
      %cst_88 = arith.constant 0.0833333358 : f32
      %213 = vector.broadcast %cst_88 : f32 to vector<8x128xf32>
      %214 = arith.subf %213, %212 : vector<8x128xf32>
      %215 = arith.mulf %203, %214 : vector<8x128xf32>
      %216 = arith.subf %207, %215 : vector<8x128xf32>
      %217 = arith.subf %216, %198 : vector<8x128xf32>
      %218 = arith.mulf %165, %217 : vector<8x128xf32>
      %cst_89 = arith.constant 0.000000e+00 : f32
      %219 = vector.shape_cast %2 : vector<1x128xi1> to vector<1x128xi1>
      %220 = vector.broadcast %219 : vector<1x128xi1> to vector<8x128xi1>
      %221 = vector.broadcast %cst_89 : f32 to vector<8x128xf32>
      %222 = arith.select %220, %85, %221 : vector<8x128xi1>, vector<8x128xf32>
      %cst_90 = arith.constant 0.000000e+00 : f32
      %223 = vector.shape_cast %2 : vector<1x128xi1> to vector<1x128xi1>
      %224 = vector.broadcast %223 : vector<1x128xi1> to vector<8x128xi1>
      %225 = vector.broadcast %cst_90 : f32 to vector<8x128xf32>
      %226 = arith.select %224, %163, %225 : vector<8x128xi1>, vector<8x128xf32>
      %cst_91 = arith.constant 0.000000e+00 : f32
      %227 = vector.shape_cast %2 : vector<1x128xi1> to vector<1x128xi1>
      %228 = vector.broadcast %227 : vector<1x128xi1> to vector<8x128xi1>
      %229 = vector.broadcast %cst_91 : f32 to vector<8x128xf32>
      %230 = arith.select %228, %218, %229 : vector<8x128xi1>, vector<8x128xf32>
      %cst_92 = arith.constant dense<0.000000e+00> : vector<8xf32>
      %231 = vector.multi_reduction <add>, %222, %cst_92 [1] : vector<8x128xf32> to vector<8xf32>
      %232 = vector.shape_cast %231 : vector<8xf32> to vector<8x1xf32>
      %cst_93 = arith.constant 1.000000e+00 : f32
      %233 = vector.broadcast %cst_93 : f32 to vector<8x1xf32>
      %234 = arith.subf %232, %233 : vector<8x1xf32>
      %cst_94 = arith.constant 1.000000e+00 : f32
      %235 = vector.broadcast %cst_94 : f32 to vector<8x1xf32>
      %cst_95 = arith.constant 1.000000e+00 : f32
      %236 = vector.broadcast %cst_95 : f32 to vector<8x1xf32>
      %cst_96 = arith.constant 1.000000e+00 : f32
      %237 = vector.broadcast %cst_96 : f32 to vector<8x1xf32>
      %238 = arith.addf %234, %237 : vector<8x1xf32>
      %239 = arith.mulf %235, %238 : vector<8x1xf32>
      %cst_97 = arith.constant 676.520386 : f32
      %240 = vector.broadcast %cst_97 : f32 to vector<8x1xf32>
      %241 = arith.mulf %240, %236 : vector<8x1xf32>
      %242 = arith.addf %239, %241 : vector<8x1xf32>
      %243 = arith.mulf %236, %238 : vector<8x1xf32>
      %cst_98 = arith.constant 2.000000e+00 : f32
      %244 = vector.broadcast %cst_98 : f32 to vector<8x1xf32>
      %245 = arith.addf %234, %244 : vector<8x1xf32>
      %246 = arith.mulf %242, %245 : vector<8x1xf32>
      %cst_99 = arith.constant -1259.13916 : f32
      %247 = vector.broadcast %cst_99 : f32 to vector<8x1xf32>
      %248 = arith.mulf %247, %243 : vector<8x1xf32>
      %249 = arith.addf %246, %248 : vector<8x1xf32>
      %250 = arith.mulf %243, %245 : vector<8x1xf32>
      %cst_100 = arith.constant 3.000000e+00 : f32
      %251 = vector.broadcast %cst_100 : f32 to vector<8x1xf32>
      %252 = arith.addf %234, %251 : vector<8x1xf32>
      %253 = arith.mulf %249, %252 : vector<8x1xf32>
      %cst_101 = arith.constant 771.323425 : f32
      %254 = vector.broadcast %cst_101 : f32 to vector<8x1xf32>
      %255 = arith.mulf %254, %250 : vector<8x1xf32>
      %256 = arith.addf %253, %255 : vector<8x1xf32>
      %257 = arith.mulf %250, %252 : vector<8x1xf32>
      %cst_102 = arith.constant 4.000000e+00 : f32
      %258 = vector.broadcast %cst_102 : f32 to vector<8x1xf32>
      %259 = arith.addf %234, %258 : vector<8x1xf32>
      %260 = arith.mulf %256, %259 : vector<8x1xf32>
      %cst_103 = arith.constant -176.615036 : f32
      %261 = vector.broadcast %cst_103 : f32 to vector<8x1xf32>
      %262 = arith.mulf %261, %257 : vector<8x1xf32>
      %263 = arith.addf %260, %262 : vector<8x1xf32>
      %264 = arith.mulf %257, %259 : vector<8x1xf32>
      %cst_104 = arith.constant 0.000000e+00 : f32
      %265 = vector.broadcast %cst_104 : f32 to vector<8x1xf32>
      %cst_105 = arith.constant 1.000000e+00 : f32
      %266 = vector.broadcast %cst_105 : f32 to vector<8x1xf32>
      %cst_106 = arith.constant 5.000000e+00 : f32
      %267 = vector.broadcast %cst_106 : f32 to vector<8x1xf32>
      %268 = arith.addf %234, %267 : vector<8x1xf32>
      %269 = arith.mulf %265, %268 : vector<8x1xf32>
      %cst_107 = arith.constant 12.5073433 : f32
      %270 = vector.broadcast %cst_107 : f32 to vector<8x1xf32>
      %271 = arith.mulf %270, %266 : vector<8x1xf32>
      %272 = arith.addf %269, %271 : vector<8x1xf32>
      %273 = arith.mulf %266, %268 : vector<8x1xf32>
      %cst_108 = arith.constant 6.000000e+00 : f32
      %274 = vector.broadcast %cst_108 : f32 to vector<8x1xf32>
      %275 = arith.addf %234, %274 : vector<8x1xf32>
      %276 = arith.mulf %272, %275 : vector<8x1xf32>
      %cst_109 = arith.constant -0.138571098 : f32
      %277 = vector.broadcast %cst_109 : f32 to vector<8x1xf32>
      %278 = arith.mulf %277, %273 : vector<8x1xf32>
      %279 = arith.addf %276, %278 : vector<8x1xf32>
      %280 = arith.mulf %273, %275 : vector<8x1xf32>
      %cst_110 = arith.constant 7.000000e+00 : f32
      %281 = vector.broadcast %cst_110 : f32 to vector<8x1xf32>
      %282 = arith.addf %234, %281 : vector<8x1xf32>
      %283 = arith.mulf %279, %282 : vector<8x1xf32>
      %cst_111 = arith.constant 9.98436917E-6 : f32
      %284 = vector.broadcast %cst_111 : f32 to vector<8x1xf32>
      %285 = arith.mulf %284, %280 : vector<8x1xf32>
      %286 = arith.addf %283, %285 : vector<8x1xf32>
      %287 = arith.mulf %280, %282 : vector<8x1xf32>
      %cst_112 = arith.constant 8.000000e+00 : f32
      %288 = vector.broadcast %cst_112 : f32 to vector<8x1xf32>
      %289 = arith.addf %234, %288 : vector<8x1xf32>
      %290 = arith.mulf %286, %289 : vector<8x1xf32>
      %cst_113 = arith.constant 1.50563267E-7 : f32
      %291 = vector.broadcast %cst_113 : f32 to vector<8x1xf32>
      %292 = arith.mulf %291, %287 : vector<8x1xf32>
      %293 = arith.addf %290, %292 : vector<8x1xf32>
      %294 = arith.mulf %287, %289 : vector<8x1xf32>
      %295 = arith.divf %263, %264 : vector<8x1xf32>
      %296 = arith.divf %293, %294 : vector<8x1xf32>
      %297 = arith.addf %295, %296 : vector<8x1xf32>
      %cst_114 = arith.constant 7.000000e+00 : f32
      %298 = vector.broadcast %cst_114 : f32 to vector<8x1xf32>
      %299 = arith.addf %234, %298 : vector<8x1xf32>
      %cst_115 = arith.constant 5.000000e-01 : f32
      %300 = vector.broadcast %cst_115 : f32 to vector<8x1xf32>
      %301 = arith.addf %299, %300 : vector<8x1xf32>
      %cst_116 = arith.constant 5.000000e-01 : f32
      %302 = vector.broadcast %cst_116 : f32 to vector<8x1xf32>
      %303 = arith.addf %234, %302 : vector<8x1xf32>
      %304 = math.log %301 : vector<8x1xf32>
      %305 = arith.mulf %303, %304 : vector<8x1xf32>
      %cst_117 = arith.constant 0.918938517 : f32
      %306 = vector.broadcast %cst_117 : f32 to vector<8x1xf32>
      %307 = arith.addf %306, %305 : vector<8x1xf32>
      %308 = arith.subf %307, %301 : vector<8x1xf32>
      %309 = math.log %297 : vector<8x1xf32>
      %310 = arith.addf %308, %309 : vector<8x1xf32>
      %cst_118 = arith.constant dense<0.000000e+00> : vector<8xf32>
      %311 = vector.multi_reduction <add>, %226, %cst_118 [1] : vector<8x128xf32> to vector<8xf32>
      %312 = vector.shape_cast %311 : vector<8xf32> to vector<8x1xf32>
      %313 = arith.subf %310, %312 : vector<8x1xf32>
      %cst_119 = arith.constant -8.52516174 : f32
      %314 = vector.broadcast %cst_119 : f32 to vector<8x1xf32>
      %315 = arith.addf %313, %314 : vector<8x1xf32>
      %cst_120 = arith.constant dense<0.000000e+00> : vector<8xf32>
      %316 = vector.multi_reduction <add>, %230, %cst_120 [1] : vector<8x128xf32> to vector<8xf32>
      %317 = vector.shape_cast %316 : vector<8xf32> to vector<8x1xf32>
      %318 = arith.addf %315, %317 : vector<8x1xf32>
      %cst_121 = arith.constant 8.000000e+00 : f32
      %319 = vector.broadcast %cst_121 : f32 to vector<8x1xf32>
      %320 = arith.subf %232, %319 : vector<8x1xf32>
      %cst_122 = arith.constant 0.000000e+00 : f32
      %321 = vector.broadcast %cst_122 : f32 to vector<8x1xf32>
      %cst_123 = arith.constant 1.000000e+00 : f32
      %322 = vector.broadcast %cst_123 : f32 to vector<8x1xf32>
      %cst_124 = arith.constant 0.000000e+00 : f32
      %323 = vector.broadcast %cst_124 : f32 to vector<8x1xf32>
      %324 = arith.addf %232, %323 : vector<8x1xf32>
      %325 = arith.mulf %321, %324 : vector<8x1xf32>
      %326 = arith.addf %325, %322 : vector<8x1xf32>
      %327 = arith.mulf %322, %324 : vector<8x1xf32>
      %cst_125 = arith.constant 1.000000e+00 : f32
      %328 = vector.broadcast %cst_125 : f32 to vector<8x1xf32>
      %329 = arith.addf %232, %328 : vector<8x1xf32>
      %330 = arith.mulf %326, %329 : vector<8x1xf32>
      %331 = arith.addf %330, %327 : vector<8x1xf32>
      %332 = arith.mulf %327, %329 : vector<8x1xf32>
      %cst_126 = arith.constant 2.000000e+00 : f32
      %333 = vector.broadcast %cst_126 : f32 to vector<8x1xf32>
      %334 = arith.addf %232, %333 : vector<8x1xf32>
      %335 = arith.mulf %331, %334 : vector<8x1xf32>
      %336 = arith.addf %335, %332 : vector<8x1xf32>
      %337 = arith.mulf %332, %334 : vector<8x1xf32>
      %cst_127 = arith.constant 3.000000e+00 : f32
      %338 = vector.broadcast %cst_127 : f32 to vector<8x1xf32>
      %339 = arith.addf %232, %338 : vector<8x1xf32>
      %340 = arith.mulf %336, %339 : vector<8x1xf32>
      %341 = arith.addf %340, %337 : vector<8x1xf32>
      %342 = arith.mulf %337, %339 : vector<8x1xf32>
      %cst_128 = arith.constant 4.000000e+00 : f32
      %343 = vector.broadcast %cst_128 : f32 to vector<8x1xf32>
      %344 = arith.addf %232, %343 : vector<8x1xf32>
      %345 = arith.mulf %341, %344 : vector<8x1xf32>
      %346 = arith.addf %345, %342 : vector<8x1xf32>
      %347 = arith.mulf %342, %344 : vector<8x1xf32>
      %cst_129 = arith.constant 5.000000e+00 : f32
      %348 = vector.broadcast %cst_129 : f32 to vector<8x1xf32>
      %349 = arith.addf %232, %348 : vector<8x1xf32>
      %350 = arith.mulf %346, %349 : vector<8x1xf32>
      %351 = arith.addf %350, %347 : vector<8x1xf32>
      %352 = arith.mulf %347, %349 : vector<8x1xf32>
      %353 = arith.divf %351, %352 : vector<8x1xf32>
      %cst_130 = arith.constant 6.000000e+00 : f32
      %354 = vector.broadcast %cst_130 : f32 to vector<8x1xf32>
      %355 = arith.addf %232, %354 : vector<8x1xf32>
      %cst_131 = arith.constant 1.000000e+00 : f32
      %356 = vector.broadcast %cst_131 : f32 to vector<8x1xf32>
      %357 = arith.divf %356, %355 : vector<8x1xf32>
      %358 = arith.mulf %357, %357 : vector<8x1xf32>
      %359 = math.log %355 : vector<8x1xf32>
      %cst_132 = arith.constant 5.000000e-01 : f32
      %360 = vector.broadcast %cst_132 : f32 to vector<8x1xf32>
      %361 = arith.mulf %360, %357 : vector<8x1xf32>
      %362 = arith.subf %359, %361 : vector<8x1xf32>
      %cst_133 = arith.constant 2.520000e+02 : f32
      %363 = vector.broadcast %cst_133 : f32 to vector<8x1xf32>
      %364 = arith.divf %358, %363 : vector<8x1xf32>
      %cst_134 = arith.constant 0.00833333377 : f32
      %365 = vector.broadcast %cst_134 : f32 to vector<8x1xf32>
      %366 = arith.subf %365, %364 : vector<8x1xf32>
      %367 = arith.mulf %358, %366 : vector<8x1xf32>
      %cst_135 = arith.constant 0.0833333358 : f32
      %368 = vector.broadcast %cst_135 : f32 to vector<8x1xf32>
      %369 = arith.subf %368, %367 : vector<8x1xf32>
      %370 = arith.mulf %358, %369 : vector<8x1xf32>
      %371 = arith.subf %362, %370 : vector<8x1xf32>
      %372 = arith.subf %371, %353 : vector<8x1xf32>
      %373 = arith.mulf %320, %372 : vector<8x1xf32>
      %374 = arith.subf %318, %373 : vector<8x1xf32>
      %c0_136 = arith.constant 0 : index
      %c0_137 = arith.constant 0 : index
      %375 = vector.load %arg15[%c0_136, %c0_137] : memref<8x1xf32, #tpu.memory_space<vmem>>, vector<8x1xf32>
      %376 = arith.mulf %375, %83 : vector<8x1xf32>
      %c0_138 = arith.constant 0 : index
      %c0_139 = arith.constant 0 : index
      %377 = vector.load %arg14[%c0_138, %c0_139] : memref<8x1xf32, #tpu.memory_space<vmem>>, vector<8x1xf32>
      %378 = arith.subf %376, %377 : vector<8x1xf32>
      %379 = arith.addf %378, %374 : vector<8x1xf32>
      %cst_140 = arith.constant dense<0.000000e+00> : vector<1xf32>
      %380 = vector.multi_reduction <add>, %379, %cst_140 [0] : vector<8x1xf32> to vector<1xf32>
      %381 = vector.shape_cast %380 : vector<1xf32> to vector<1x1xf32>
      %cst_141 = arith.constant 1.250000e-01 : f32
      %382 = vector.broadcast %cst_141 : f32 to vector<1x1xf32>
      %383 = arith.mulf %381, %382 : vector<1x1xf32>
      %c0_142 = arith.constant 0 : index
      %c0_143 = arith.constant 0 : index
      %384 = vector.load %arg9[%c0_142, %c0_143] : memref<1x1xf32, #tpu.memory_space<vmem>>, vector<1x1xf32>
      tpu.vector_store %arg9[%c0_142, %c0_143], %383 {strides = array<i32>} : memref<1x1xf32, #tpu.memory_space<vmem>>, vector<1x1xf32>,
      %cst_144 = arith.constant dense<0.000000e+00> : vector<1xf32>
      %385 = vector.multi_reduction <add>, %374, %cst_144 [0] : vector<8x1xf32> to vector<1xf32>
      %386 = vector.shape_cast %385 : vector<1xf32> to vector<1x1xf32>
      %cst_145 = arith.constant 1.250000e-01 : f32
      %387 = vector.broadcast %cst_145 : f32 to vector<1x1xf32>
      %388 = arith.mulf %386, %387 : vector<1x1xf32>
      %c0_146 = arith.constant 0 : index
      %c0_147 = arith.constant 0 : index
      %389 = vector.load %arg10[%c0_146, %c0_147] : memref<1x1xf32, #tpu.memory_space<vmem>>, vector<1x1xf32>
      tpu.vector_store %arg10[%c0_146, %c0_147], %388 {strides = array<i32>} : memref<1x1xf32, #tpu.memory_space<vmem>>, vector<1x1xf32>,
    } else {
    }
    return
  }
  func.func @transform_0(%arg0: i32) -> (i32, i32) {
    %c0_i32 = arith.constant 0 : i32
    %c0_i32_0 = arith.constant 0 : i32
    return %c0_i32, %arg0 : i32, i32
  }
  func.func @transform_1(%arg0: i32) -> (i32, i32) {
    %c0_i32 = arith.constant 0 : i32
    %c0_i32_0 = arith.constant 0 : i32
    %c0_i32_1 = arith.constant 0 : i32
    return %c0_i32, %c0_i32_0 : i32, i32
  }
  func.func @transform_2(%arg0: i32) -> (i32, i32) {
    %c0_i32 = arith.constant 0 : i32
    %c0_i32_0 = arith.constant 0 : i32
    %c0_i32_1 = arith.constant 0 : i32
    return %c0_i32, %c0_i32_0 : i32, i32
  }
  func.func @transform_3(%arg0: i32) -> (i32, i32) {
    %c0_i32 = arith.constant 0 : i32
    %c0_i32_0 = arith.constant 0 : i32
    %c0_i32_1 = arith.constant 0 : i32
    return %c0_i32, %c0_i32_0 : i32, i32
  }
  func.func @transform_4(%arg0: i32) -> (i32, i32) {
    %c0_i32 = arith.constant 0 : i32
    %c0_i32_0 = arith.constant 0 : i32
    return %c0_i32, %arg0 : i32, i32
  }
  func.func @transform_5(%arg0: i32) -> (i32, i32) {
    %c0_i32 = arith.constant 0 : i32
    %c0_i32_0 = arith.constant 0 : i32
    return %c0_i32, %arg0 : i32, i32
  }
  func.func @transform_6(%arg0: i32) -> (i32, i32) {
    %c0_i32 = arith.constant 0 : i32
    %c0_i32_0 = arith.constant 0 : i32
    return %c0_i32, %arg0 : i32, i32
  }
  func.func @transform_7(%arg0: i32) -> (i32, i32) {
    %c0_i32 = arith.constant 0 : i32
    %c0_i32_0 = arith.constant 0 : i32
    %c0_i32_1 = arith.constant 0 : i32
    return %c0_i32, %c0_i32_0 : i32, i32
  }
  func.func @transform_8(%arg0: i32) -> (i32, i32) {
    %c0_i32 = arith.constant 0 : i32
    %c0_i32_0 = arith.constant 0 : i32
    %c0_i32_1 = arith.constant 0 : i32
    return %c0_i32, %c0_i32_0 : i32, i32
  }
  func.func @transform_9(%arg0: i32) -> (i32, i32) {
    %c0_i32 = arith.constant 0 : i32
    %c0_i32_0 = arith.constant 0 : i32
    %c0_i32_1 = arith.constant 0 : i32
    return %c0_i32, %c0_i32_0 : i32, i32
  }
}

module attributes {stable_mosaic.version = 11 : i64} {
  func.func @_normalize_kernel(%arg0: i32, %arg1: memref<8x1xf32, #tpu.memory_space<vmem>>, %arg2: memref<8x128xf32, #tpu.memory_space<vmem>>, %arg3: memref<8x128xf32, #tpu.memory_space<vmem>>) attributes {dimension_semantics = [#tpu.dimension_semantics<parallel>], iteration_bounds = array<i64: 1>, scalar_prefetch = 0 : i64, scratch_operands = 0 : i64, tpu.core_type = #tpu.core_type<tc>, window_params = [{pipeline_mode = #tpu.pipeline_mode<synchronous>, transform_indices = @transform_0, window_bounds = array<i64: 8, 1>}, {transform_indices = @transform_1, window_bounds = array<i64: 8, 128>}, {transform_indices = @transform_2, window_bounds = array<i64: 8, 128>}]} {
    %c0 = arith.constant 0 : index
    %c0_0 = arith.constant 0 : index
    %0 = vector.load %arg2[%c0, %c0_0] : memref<8x128xf32, #tpu.memory_space<vmem>>, vector<8x128xf32>
    %c0_1 = arith.constant 0 : index
    %c0_2 = arith.constant 0 : index
    %1 = vector.load %arg1[%c0_1, %c0_2] : memref<8x1xf32, #tpu.memory_space<vmem>>, vector<8x1xf32>
    %2 = vector.broadcast %1 : vector<8x1xf32> to vector<8x128xf32>
    %3 = arith.subf %0, %2 : vector<8x128xf32>
    %4 = math.exp %3 : vector<8x128xf32>
    %c0_3 = arith.constant 0 : index
    %c0_4 = arith.constant 0 : index
    %5 = vector.load %arg3[%c0_3, %c0_4] : memref<8x128xf32, #tpu.memory_space<vmem>>, vector<8x128xf32>
    tpu.vector_store %arg3[%c0_3, %c0_4], %4 {strides = array<i32>} : memref<8x128xf32, #tpu.memory_space<vmem>>, vector<8x128xf32>,
    return
  }
  func.func @transform_0(%arg0: i32) -> (i32, i32) {
    %c0_i32 = arith.constant 0 : i32
    %c0_i32_0 = arith.constant 0 : i32
    %c0_i32_1 = arith.constant 0 : i32
    return %c0_i32, %c0_i32_0 : i32, i32
  }
  func.func @transform_1(%arg0: i32) -> (i32, i32) {
    %c0_i32 = arith.constant 0 : i32
    %c0_i32_0 = arith.constant 0 : i32
    return %c0_i32, %arg0 : i32, i32
  }
  func.func @transform_2(%arg0: i32) -> (i32, i32) {
    %c0_i32 = arith.constant 0 : i32
    %c0_i32_0 = arith.constant 0 : i32
    return %c0_i32, %arg0 : i32, i32
  }
}

</mosaic_0001>

<bundles_post_ra>
// kernel: _lambda_.4
= control target key start
LH: loop header
LB: loop body
LE: loop exit
PB: predicated region body
PF: predicated region fallthrough
CT: control target
= control target key end

     0   :  { %7 = vsyncpa [#allocation3], 0  ;;  %s189_s12 = smov [#allocation2]   ;;  %s190_s14 = smov 64   ;;  %s216_s0 = inlined_call_operand.vmem [shape: f32[8,128], index: 0, kind: input, shape index: {}]   ;;  %s217_s1 = inlined_call_operand.hbm [shape: bf16[128,128], index: 1, kind: input, shape index: {}]   ;;  %s218_s2 = inlined_call_operand.vmem [shape: f32[8,128], index: 2, kind: output, shape index: {}]  }
   0x1   :  { %s14_s11 = sshll.u32 %s217_s1, 4  ;;  %s16_s13 = sshll.u32 %s189_s12, 4  ;;  %s15_s11 = int_to_ptr.hbm [resolvable:$true] %s14_s11  ;;  %s17_s13 = int_to_ptr.vmem [resolvable:$true] %s16_s13 }
   0x2   :  { %s191_s15 = smov 4  }
   0x3   :  { %22 = dma.hbm_to_vmem [thread:$0]  %s15_s11, 1024, %s17_s13, [#allocation3], %s190_s14, %s190_s14, %s191_s15  }
   0x4   :  { %187 = dma.done.wait [#allocation3], 1024  }
   0x5   :  { %188 = vsyncadd [#allocation3], 4294966272  ;;  %v158_v0 = vld [vmem:[#allocation2 + $0x38] sm:$0xff]  ;;  %v157_v1 = vld [vmem:[#allocation2 + $0x30] sm:$0xff] }
   0x6   :  { %99 = vmatpush.bf16.msra.mxu0 %v158_v0  ;;  %v156_v2 = vld [vmem:[#allocation2 + $0x28] sm:$0xff]  ;;  %v155_v3 = vld [vmem:[#allocation2 + $0x20] sm:$0xff]  ;;  %v154_v4 = vld [vmem:[#allocation2 + $0x18] sm:$0xff] }
   0x7   :  { %v153_v5 = vld [vmem:[#allocation2 + $0x10] sm:$0xff]  ;;  %v152_v6 = vld [vmem:[#allocation2 + $0x8] sm:$0xff]  ;;  %v151_v7 = vld [vmem:[#allocation2] sm:$0xff] }
   0x8   :  { %v33_v8 = vld [vmem:[%s216_s0] sm:$0xff] }
   0x9   :  { %v34_v9 = vpack.c.bf16 %v33_v8, %v33_v8 }
   0xa   :  { %100 = vmatpush.bf16.msra.mxu0 %v157_v1 }
   0xe   :  { %101 = vmatpush.bf16.msra.mxu0 %v156_v2 }
  0x12   :  { %102 = vmatpush.bf16.msra.mxu0 %v155_v3 }
  0x16   :  { %103 = vmatpush.bf16.msra.mxu0 %v154_v4 }
  0x1a   :  { %104 = vmatpush.bf16.msra.mxu0 %v153_v5 }
  0x1e   :  { %105 = vmatpush.bf16.msra.mxu0 %v152_v6 }
  0x22   :  { %106 = vmatpush.bf16.msra.mxu0 %v151_v7 }
  0x25   :  { %107 = vmatmul.bf16.vlgmr.msra.gmra.mxu0 %v34_v9 }
  0xa2   :  { %v108_v10 = vpop.f32.mrf.mxu0 }
  0xa3   :  { %113 = vst [vmem:[%s218_s2] sm:$0xff] %v108_v10 }
  0xaa   :  { %v110_v11 = vpop.f32.mrf.mxu0 }
  0xab   :  { %118 = vsyncpa [#allocation3], 1 }

// kernel: _lambda_.5
= control target key start
LH: loop header
LB: loop body
LE: loop exit
PB: predicated region body
PF: predicated region fallthrough
CT: control target
= control target key end

     0   :  { %17 = vsyncpa [#allocation3], 0  ;;  %s431_s0 = inlined_call_operand.vmem [shape: f32[8,128], index: 0, kind: input, shape index: {}]   ;;  %s432_s1 = inlined_call_operand.vmem [shape: f32[1,128], index: 1, kind: input, shape index: {}]   ;;  %s433_s2 = inlined_call_operand.hbm [shape: f32[128,128], index: 2, kind: input, shape index: {}]   ;;  %s434_s3 = inlined_call_operand.vmem [shape: f32[1,128], index: 3, kind: input, shape index: {}]   ;;  %s435_s4 = inlined_call_operand.vmem [shape: f32[1,128], index: 4, kind: input, shape index: {}]   ;;  %s436_s5 = inlined_call_operand.vmem [shape: f32[1,128], index: 5, kind: input, shape index: {}]   ;;  %s437_s6 = inlined_call_operand.hbm [shape: f32[128,128], index: 6, kind: input, shape index: {}]   ;;  %s438_s7 = inlined_call_operand.vmem [shape: f32[1,128], index: 7, kind: input, shape index: {}]   ;;  %s439_s8 = inlined_call_operand.vmem [shape: f32[1,128], index: 8, kind: input, shape index: {}]   ;;  %s440_s9 = inlined_call_operand.vmem [shape: f32[1,128], index: 9, kind: input, shape index: {}]   ;;  %s441_s10 = inlined_call_operand.vmem [shape: f32[8,128], index: 10, kind: output, shape index: {0}]   ;;  %s442_s11 = inlined_call_operand.vmem [shape: f32[8,128], index: 11, kind: output, shape index: {1}]  }
   0x1   :  { %s27_s19 = sshll.u32 %s433_s2, 4  ;;  %s28_s19 = int_to_ptr.hbm [resolvable:$true] %s27_s19 }
   0x2   :  { %18 = vsyncpa [#allocation5], 0  ;;  %s330_s20 = smov [#allocation2]   ;;  %s46_s24 = sshll.u32 %s437_s6, 4  ;;  %s47_s24 = int_to_ptr.hbm [resolvable:$true] %s46_s24 }
   0x3   :  { %s29_s21 = sshll.u32 %s330_s20, 4  ;;  %s331_s25 = smov 128   ;;  %s30_s21 = int_to_ptr.vmem [resolvable:$true] %s29_s21 }
   0x4   :  { %s332_s26 = smov 8   ;;  %s333_s27 = smov [#allocation4]  }
   0x5   :  { %35 = dma.hbm_to_vmem [thread:$0]  %s28_s19, 2048, %s30_s21, [#allocation3], %s331_s25, %s331_s25, %s332_s26  }
   0x6   :  { %s48_s28 = sshll.u32 %s333_s27, 4  ;;  %s49_s28 = int_to_ptr.vmem [resolvable:$true] %s48_s28 }
   0x7   :  { %54 = dma.hbm_to_vmem [thread:$0]  %s47_s24, 2048, %s49_s28, [#allocation5], %s331_s25, %s331_s25, %s332_s26  }
   0x8   :  { %326 = dma.done.wait [#allocation3], 2048  }
   0x9   :  { %327 = vsyncadd [#allocation3], 4294965248 }
   0xa   :  { %328 = dma.done.wait [#allocation5], 2048  }
   0xb   :  { %329 = vsyncadd [#allocation5], 4294965248  ;;  %v91_v0 = vld [vmem:[#allocation2 + $0x78] sm:$0xff]  ;;  %v90_v1 = vld [vmem:[#allocation2 + $0x70] sm:$0xff] }
   0xc   :  { %96 = vmatpush.msra.mxu0 %v91_v0  ;;  %v89_v2 = vld [vmem:[#allocation2 + $0x68] sm:$0xff]  ;;  %v88_v3 = vld [vmem:[#allocation2 + $0x60] sm:$0xff]  ;;  %v87_v4 = vld [vmem:[#allocation2 + $0x58] sm:$0xff] }
   0xd   :  { %v86_v5 = vld [vmem:[#allocation2 + $0x50] sm:$0xff]  ;;  %v85_v6 = vld [vmem:[#allocation2 + $0x48] sm:$0xff]  ;;  %v84_v7 = vld [vmem:[#allocation2 + $0x40] sm:$0xff] }
   0xe   :  { %97 = vmatpush.msra.mxu0 %v90_v1  ;;  %v83_v8 = vld [vmem:[#allocation2 + $0x38] sm:$0xff]  ;;  %v82_v9 = vld [vmem:[#allocation2 + $0x30] sm:$0xff]  ;;  %v81_v10 = vld [vmem:[#allocation2 + $0x28] sm:$0xff] }
   0xf   :  { %v80_v11 = vld [vmem:[#allocation2 + $0x20] sm:$0xff]  ;;  %v79_v14 = vld [vmem:[#allocation2 + $0x18] sm:$0xff]  ;;  %v78_v15 = vld [vmem:[#allocation2 + $0x10] sm:$0xff] }
  0x10   :  { %98 = vmatpush.msra.mxu0 %v89_v2  ;;  %v265_v12 = vld [vmem:[%s432_s1] ss:$0 sm:$0xff]  ;;  %v77_v17 = vld [vmem:[#allocation2 + $0x8] sm:$0xff]  ;;  %v170_v23 = vld [vmem:[#allocation4 + $0x78] sm:$0xff] }
  0x11   :  { %v69_v13 = vld [vmem:[%s431_s0] sm:$0xff]  ;;  %175 = vmatpush.msra.mxu1 %v170_v23  ;;  %v169_v25 = vld [vmem:[#allocation4 + $0x70] sm:$0xff]  ;;  %v168_v27 = vld [vmem:[#allocation4 + $0x68] sm:$0xff] }
  0x12   :  { %99 = vmatpush.msra.mxu0 %v88_v3  ;;  %v74_v16 = vadd.f32 %v265_v12, %v69_v13  ;;  %v76_v18 = vld [vmem:[#allocation2] sm:$0xff]  ;;  %v166_v30 = vld [vmem:[#allocation4 + $0x58] sm:$0xff]  ;;  %v165_v32 = vld [vmem:[#allocation4 + $0x50] sm:$0xff] }
  0x13   :  { %v266_v20 = vld [vmem:[%s434_s3] ss:$0 sm:$0xff]  ;;  %176 = vmatpush.msra.mxu1 %v169_v25  ;;  %v164_v34 = vld [vmem:[#allocation4 + $0x48] sm:$0xff]  ;;  %v162_v38 = vld [vmem:[#allocation4 + $0x38] sm:$0xff] }
  0x14   :  { %100 = vmatpush.msra.mxu0 %v87_v4  ;;  %v75_v19 = vmax.f32 %v74_v16, 0.0  ;;  %v167_v28 = vld [vmem:[#allocation4 + $0x60] sm:$0xff]  ;;  %v161_v40 = vld [vmem:[#allocation4 + $0x30] sm:$0xff]  ;;  %v160_v42 = vld [vmem:[#allocation4 + $0x28] sm:$0xff] }
  0x15   :  { %177 = vmatpush.msra.mxu1 %v168_v27  ;;  %v163_v36 = vld [vmem:[#allocation4 + $0x40] sm:$0xff]  ;;  %v158_v46 = vld [vmem:[#allocation4 + $0x18] sm:$0xff]  ;;  %v157_v48 = vld [vmem:[#allocation4 + $0x10] sm:$0xff] }
  0x16   :  { %101 = vmatpush.msra.mxu0 %v86_v5  ;;  %v159_v44 = vld [vmem:[#allocation4 + $0x20] sm:$0xff]  ;;  %v156_v50 = vld [vmem:[#allocation4 + $0x8] sm:$0xff] }
  0x17   :  { %178 = vmatpush.msra.mxu1 %v167_v28  ;;  %v155_v52 = vld [vmem:[#allocation4] sm:$0xff] }
  0x18   :  { %102 = vmatpush.msra.mxu0 %v85_v6  ;;  %v116_v61 = vld [vmem:[%s435_s4] sm:$0x1] }
  0x19   :  { %179 = vmatpush.msra.mxu1 %v166_v30  ;;  %v267_v2 = vld [vmem:[%s436_s5] ss:$0 sm:$0xff] }
  0x1a   :  { %103 = vmatpush.msra.mxu0 %v84_v7  ;;  %v268_v6 = vld [vmem:[%s438_s7] ss:$0 sm:$0xff] }
  0x1b   :  { %180 = vmatpush.msra.mxu1 %v165_v32 }
  0x1c   :  { %104 = vmatpush.msra.mxu0 %v83_v8 }
  0x1d   :  { %181 = vmatpush.msra.mxu1 %v164_v34  ;;  %v334_v34 = vmov 1e+10  }
  0x1e   :  { %105 = vmatpush.msra.mxu0 %v82_v9 }
  0x1f   :  { %182 = vmatpush.msra.mxu1 %v163_v36 }
  0x20   :  { %106 = vmatpush.msra.mxu0 %v81_v10 }
  0x21   :  { %183 = vmatpush.msra.mxu1 %v162_v38 }
  0x22   :  { %107 = vmatpush.msra.mxu0 %v80_v11 }
  0x23   :  { %184 = vmatpush.msra.mxu1 %v161_v40 }
  0x24   :  { %108 = vmatpush.msra.mxu0 %v79_v14 }
  0x25   :  { %185 = vmatpush.msra.mxu1 %v160_v42 }
  0x26   :  { %109 = vmatpush.msra.mxu0 %v78_v15 }
  0x27   :  { %186 = vmatpush.msra.mxu1 %v159_v44 }
  0x28   :  { %110 = vmatpush.msra.mxu0 %v77_v17 }
  0x29   :  { %187 = vmatpush.msra.mxu1 %v158_v46 }
  0x2a   :  { %111 = vmatpush.msra.mxu0 %v76_v18 }
  0x2b   :  { %112 = vmatmul.f32.vlgmr.msra.gmra.mxu0 %v75_v19  ;;  %188 = vmatpush.msra.mxu1 %v157_v48 }
  0x2d   :  { %189 = vmatpush.msra.mxu1 %v156_v50 }
  0x2f   :  { %190 = vmatpush.msra.mxu1 %v155_v52 }
  0xa8   :  { %v113_v21 = vpop.f32.mrf.mxu0 }
  0xa9   :  { %v114_v22 = vadd.f32 %v266_v20, %v113_v21 }
  0xab   :  { %v118_v24 = vrot.slane %v114_v22, 4 }
  0xad   :  { %v119_v26 = vadd.f32 %v118_v24, %v114_v22 }
  0xaf   :  { %v120_v29 = vrot.slane %v119_v26, 2 }
  0xb1   :  { %v121_v31 = vadd.f32 %v120_v29, %v119_v26 }
  0xb3   :  { %v122_v33 = vrot.slane %v121_v31, 1 }
  0xb5   :  { %v123_v35 = vadd.f32 %v122_v33, %v121_v31  ;;  %v195_v31 = vld [vmem:[%s439_s8] sm:$0x1] }
  0xb7   :  { %v124_v37 = vmul.f32 0.125, %v123_v35 }
  0xb9   :  { %v125_v39 = vsub.f32 %v114_v22, %v124_v37  ;;  %v269_v37 = vld [vmem:[%s440_s9] ss:$0 sm:$0xff] }
  0xbb   :  { %v126_v41 = vmul.f32 %v125_v39, %v125_v39 }
  0xbd   :  { %v127_v43 = vrot.slane %v126_v41, 4 }
  0xbf   :  { %v128_v45 = vadd.f32 %v127_v43, %v126_v41 }
  0xc1   :  { %v129_v47 = vrot.slane %v128_v45, 2 }
  0xc3   :  { %v130_v49 = vadd.f32 %v129_v47, %v128_v45 }
  0xc5   :  { %v131_v51 = vrot.slane %v130_v49, 1 }
  0xc7   :  { %v132_v53 = vadd.f32 %v131_v51, %v130_v49 }
  0xc9   :  { %v133_v54 = vmul.f32 0.125, %v132_v53 }
  0xcb   :  { %v134_v55 = vadd.f32 1e-05, %v133_v54 }
  0xcd   :  { %270 = vrsqrt.f32 %v134_v55  ;;  %vm141_vm1 = vweird.f32 %v134_v55 }
  0xd3   :  { %v271_v56 = vpop.eup %270 }
  0xd4   :  { %v136_v57 = vmul.f32 %v271_v56, %v134_v55  ;;  %vm142_vm0 = vweird.f32 %v271_v56 }
  0xd5   :  { %vm143_vm2 = vmor %vm141_vm1, %vm142_vm0 }
  0xd6   :  { %v137_v58 = vmul.f32 %v271_v56, %v136_v57 }
  0xd8   :  { %v138_v59 = vmul.f32 0.5, %v137_v58 }
  0xda   :  { %v139_v60 = vsub.f32 1.5, %v138_v59 }
  0xdc   :  { %v140_v62 = vmul.f32 %v271_v56, %v139_v60 }
  0xde   :  { %v144_v63 = vsel %vm143_vm2, %v271_v56, %v140_v62 }
  0xdf   :  { %v145_v0 = vmul.f32 %v144_v63, %v116_v61 }
  0xe1   :  { %v147_v1 = vperm.slane %v145_v0, 0 }
  0xe3   :  { %v149_v3 = vmul.f32 %v147_v1, %v125_v39 }
  0xe5   :  { %v153_v4 = vadd.f32 %v267_v2, %v149_v3 }
  0xe7   :  { %v154_v5 = vmax.f32 %v153_v4, 0.0 }
  0xe9   :  { %191 = vmatmul.f32.vlgmr.msra.gmra.mxu1 %v154_v5 }
 0x166   :  { %v192_v7 = vpop.f32.mrf.mxu1 }
 0x167   :  { %v193_v8 = vadd.f32 %v268_v6, %v192_v7 }
 0x169   :  { %v197_v9 = vrot.slane %v193_v8, 4 }
 0x16b   :  { %v198_v10 = vadd.f32 %v197_v9, %v193_v8 }
 0x16d   :  { %v199_v11 = vrot.slane %v198_v10, 2 }
 0x16f   :  { %v200_v12 = vadd.f32 %v199_v11, %v198_v10 }
 0x171   :  { %v201_v13 = vrot.slane %v200_v12, 1 }
 0x173   :  { %v202_v14 = vadd.f32 %v201_v13, %v200_v12 }
 0x175   :  { %v203_v15 = vmul.f32 0.125, %v202_v14 }
 0x177   :  { %v204_v16 = vsub.f32 %v193_v8, %v203_v15 }
 0x179   :  { %v205_v17 = vmul.f32 %v204_v16, %v204_v16 }
 0x17b   :  { %v206_v18 = vrot.slane %v205_v17, 4 }
 0x17d   :  { %v207_v19 = vadd.f32 %v206_v18, %v205_v17 }
 0x17f   :  { %v208_v20 = vrot.slane %v207_v19, 2 }
 0x181   :  { %v209_v21 = vadd.f32 %v208_v20, %v207_v19 }
 0x183   :  { %v210_v22 = vrot.slane %v209_v21, 1 }
 0x185   :  { %v211_v23 = vadd.f32 %v210_v22, %v209_v21 }
 0x187   :  { %v212_v24 = vmul.f32 0.125, %v211_v23 }
 0x189   :  { %v213_v25 = vadd.f32 1e-05, %v212_v24 }
 0x18b   :  { %272 = vrsqrt.f32 %v213_v25  ;;  %vm220_vm4 = vweird.f32 %v213_v25 }
 0x18c   :  { %274 = vrcp.f32 %v334_v34 }
 0x191   :  { %v273_v26 = vpop.eup %272 }
 0x192   :  { %v215_v27 = vmul.f32 %v273_v26, %v213_v25  ;;  %vm221_vm3 = vweird.f32 %v273_v26  ;;  %v275_v39 = vpop.eup %274 }
 0x193   :  { %vm222_vm5 = vmor %vm220_vm4, %vm221_vm3  ;;  %v242_v42 = vmul.f32 1e+10, %v275_v39  ;;  %vm246_vm6 = vweird.f32 %v275_v39 }
 0x194   :  { %v216_v28 = vmul.f32 %v273_v26, %v215_v27 }
 0x195   :  { %v243_v44 = vsub.f32 1.0, %v242_v42 }
 0x196   :  { %v217_v29 = vmul.f32 0.5, %v216_v28 }
 0x197   :  { %v244_v45 = vmul.f32 %v275_v39, %v243_v44 }
 0x198   :  { %v218_v30 = vsub.f32 1.5, %v217_v29 }
 0x199   :  { %v245_v48 = vadd.f32 %v275_v39, %v244_v45 }
 0x19a   :  { %v219_v32 = vmul.f32 %v273_v26, %v218_v30 }
 0x19b   :  { %v247_v51 = vsel %vm246_vm6, %v275_v39, %v245_v48 }
 0x19c   :  { %v223_v33 = vsel %vm222_vm5, %v273_v26, %v219_v32 }
 0x19d   :  { %v224_v35 = vmul.f32 %v223_v33, %v195_v31 }
 0x19f   :  { %v226_v36 = vperm.slane %v224_v35, 0 }
 0x1a1   :  { %v228_v38 = vmul.f32 %v226_v36, %v204_v16 }
 0x1a3   :  { %v232_v40 = vadd.f32 %v269_v37, %v228_v38 }
 0x1a5   :  { %v233_v41 = vmul.f32 0.25, %v232_v40 }
 0x1a7   :  { %v234_v43 = vmul.f32 1.442695, %v233_v41 }
 0x1a9   :  { %276 = vpow2.f32 %v234_v43 }
 0x1af   :  { %v277_v46 = vpop.eup %276 }
 0x1b0   :  { %v236_v47 = vmax.f32 %v277_v46, 0.0 }
 0x1b2   :  { %v237_v49 = vmin.f32 %v236_v47, 30.0 }
 0x1b4   :  { %238 = vst [vmem:[%s441_s10] sm:$0xff] %v237_v49  ;;  %v239_v50 = vmul.f32 1e+10, %v237_v49 }
 0x1b6   :  { %v240_v52 = vfloor.f32 %v239_v50 }
 0x1b8   :  { %v248_v53 = vmul.f32 %v247_v51, %v240_v52 }
 0x1ba   :  { %249 = vst [vmem:[%s442_s11] sm:$0xff] %v248_v53 }
 0x1bb   :  { %258 = vsyncpa [#allocation3], 1 }
 0x1bc   :  { %259 = vsyncpa [#allocation5], 1 }

// kernel: _lambda_.7
= control target key start
LH: loop header
LB: loop body
LE: loop exit
PB: predicated region body
PF: predicated region fallthrough
CT: control target
= control target key end

     0   :  { %v30_v0 = vmov 0   ;;  %s55_s0 = inlined_call_operand.vmem [shape: f32[8,1], index: 0, kind: input, shape index: {}]   ;;  %s56_s1 = inlined_call_operand.vmem [shape: f32[8,128], index: 1, kind: input, shape index: {}, may-alias: {1,2}]   ;;  %s57_s2 = inlined_call_operand.vmem [shape: f32[8,128], index: 2, kind: output, shape index: {}, may-alias: {1,2}]  }
   0x1   :  { %27 = vset.pattern.permute.xlu0 %v30_v0  ;;  %v12_v1 = vld [vmem:[%s55_s0] sm:$0xff] }
   0x2   :  { %15 = vperm.xlu0 %27, %v12_v1   ;;  %v11_v2 = vld [vmem:[%s56_s1] sm:$0xff] }
  0x74   :  { %v16_v3 = vpop.permute.xlu0 %15 }
  0x75   :  { %v18_v4 = vsub.f32 %v11_v2, %v16_v3 }
  0x77   :  { %v19_v5 = vmul.f32 1.442695, %v18_v4 }
  0x79   :  { %28 = vpow2.f32 %v19_v5 }
  0x7f   :  { %v29_v6 = vpop.eup %28 }
  0x80   :  { %21 = vst [vmem:[%s57_s2] sm:$0xff] %v29_v6 }

// kernel: _lambda_.6
= control target key start
LH: loop header
LB: loop body
LE: loop exit
PB: predicated region body
PF: predicated region fallthrough
CT: control target
= control target key end

     0   :  { %15 = vsyncpa [#allocation8], 0  ;;  %v29_v0 = vlaneseq  ;;  %s1244_s0 = inlined_call_operand.vmem [shape: f32[8,128], index: 0, kind: input, shape index: {}]   ;;  %s1245_s1 = inlined_call_operand.vmem [shape: f32[8,128], index: 1, kind: input, shape index: {}]   ;;  %s1246_s2 = inlined_call_operand.vmem [shape: f32[8,128], index: 2, kind: input, shape index: {}]   ;;  %s1247_s3 = inlined_call_operand.vmem [shape: f32[8,128], index: 3, kind: input, shape index: {}]   ;;  %s1248_s4 = inlined_call_operand.vmem [shape: bf16[128,128], index: 4, kind: input, shape index: {}]   ;;  %s1249_s5 = inlined_call_operand.vmem [shape: f32[8,128], index: 5, kind: input, shape index: {}]   ;;  %s1250_s6 = inlined_call_operand.vmem [shape: f32[8,128], index: 6, kind: output, shape index: {0}]   ;;  %s1251_s7 = inlined_call_operand.vmem [shape: f32[8,1], index: 7, kind: output, shape index: {1}]   ;;  %s1252_s8 = inlined_call_operand.hbm [shape: f32[1,1], index: 8, kind: output, shape index: {2}]   ;;  %s1253_s9 = inlined_call_operand.hbm [shape: f32[1,1], index: 9, kind: output, shape index: {3}]  }
   0x1   :  { %v815_v1 = vld [vmem:[%s1245_s1] sm:$0xff]  ;;  %v653_v4 = vld [vmem:[%s1248_s4 + $0x38] sm:$0xff]  ;;  %v652_v8 = vld [vmem:[%s1248_s4 + $0x30] sm:$0xff] }
   0x2   :  { %v43_v2 = vld [vmem:[%s1246_s2] sm:$0xff]  ;;  %v824_v5 = vand.u32 127, %v29_v0  ;;  %138 = vmatpush.bf16.msra.mxu0 %v653_v4 }
   0x3   :  { %v44_v3 = vsub.f32 %v815_v1, %v43_v2  ;;  %v41_v6 = vld [vmem:[%s1247_s3] sm:$0xff] }
   0x5   :  { %v45_v7 = vmul.f32 0.01, %v44_v3 }
   0x6   :  { %16 = vsyncpa [#allocation10], 0  ;;  %vm31_vm0 = vcmp.lt.s32.totalorder %v824_v5, 8  ;;  %139 = vmatpush.bf16.msra.mxu0 %v652_v8  ;;  %v651_v11 = vld [vmem:[%s1248_s4 + $0x28] sm:$0xff]  ;;  %v650_v12 = vld [vmem:[%s1248_s4 + $0x20] sm:$0xff]  ;;  %vm36_vm5 = vcmask 7168  }
   0x7   :  { %v46_v9 = vadd.f32 %v45_v7, %v41_v6  ;;  %v649_v13 = vld [vmem:[%s1248_s4 + $0x18] sm:$0xff]  ;;  %v648_v14 = vld [vmem:[%s1248_s4 + $0x10] sm:$0xff]  ;;  %v647_v15 = vld [vmem:[%s1248_s4 + $0x8] sm:$0xff]  ;;  %v756_v51 = vmov -1e+30   ;;  %vm187_vm9 = vcmp.lt.s32.totalorder %v824_v5, 64 }
   0x8   :  { %v646_v16 = vld [vmem:[%s1248_s4] sm:$0xff]  ;;  %37 = vst.msk [vmem:[#allocation3] sm:$0xff] %vm36_vm5, %v756_v51  ;;  %v757_v6 = vmov 0.0   ;;  %v758_v7 = vmov 0   ;;  %s761_s2 = smov [#allocation7]   ;;  %s582_s20 = sshll.u32 %s1252_s8, 4  ;;  %s583_s20 = int_to_ptr.hbm [resolvable:$true] %s582_s20 }
   0x9   :  { %v49_v10 = vsel %vm31_vm0, %v46_v9, 0.0  ;;  %v662_v30 = vld [vmem:[%s1249_s5] ss:$0 sm:$0xff]  ;;  %v69_v57 = vld [vmem:[%s1249_s5 + $0x1] sm:$0x1]  ;;  %39 = vst.msk [vmem:[#allocation5] sm:$0xff] %vm36_vm5, %v757_v6  ;;  %660 = vset.pattern.permute.xlu1 %v758_v7  ;;  %661 = vset.pattern.permute.xlu0 %v758_v7 }
   0xa   :  { %50 = vadd.xlane.f32.xlu0 %v49_v10  ;;  %140 = vmatpush.bf16.msra.mxu0 %v651_v11  ;;  %v663_v62 = vld [vmem:[%s1249_s5 + $0x2] ss:$0 sm:$0xff]  ;;  %38 = vst.msk [vmem:[#allocation4] sm:$0xff] %vm36_vm5, %v757_v6  ;;  %s580_s18 = sshll.u32 %s761_s2, 4  ;;  %s581_s18 = int_to_ptr.vmem [resolvable:$true] %s580_s18 }
   0xb   :  { %v876_v3 = vld [vmem:[%s1244_s0] sm:$0xff]  ;;  %40 = vst.msk [vmem:[#allocation6] sm:$0xff] %vm36_vm5, %v757_v6 }
   0xe   :  { %141 = vmatpush.bf16.msra.mxu0 %v650_v12 }
   0xf   :  { %v883_v8 = vld [vmem:[#allocation3] sm:$0xff] }
  0x10   :  { %v216_v12 = vld [vmem:[#allocation5] sm:$0xff] }
  0x12   :  { %142 = vmatpush.bf16.msra.mxu0 %v649_v13 }
  0x16   :  { %143 = vmatpush.bf16.msra.mxu0 %v648_v14 }
  0x1a   :  { %144 = vmatpush.bf16.msra.mxu0 %v647_v15  ;;  %v390_v15 = vsel %vm31_vm0, %v815_v1, 0.0 }
  0x1e   :  { %145 = vmatpush.bf16.msra.mxu0 %v646_v16  ;;  %v898_v16 = vadd.f32 -1.0, %v815_v1 }
  0x7d   :  { %v51_v17 = vpop.xlane.xlu0 %50 }
  0x7e   :  { %664 = vrcp.f32 %v51_v17  ;;  %v63_v21 = vand.u32 2147483648, %v51_v17  ;;  %v61_v23 = vand.u32 2147483647, %v51_v17  ;;  %vm57_vm2 = vweird.f32 %v51_v17 }
  0x80   :  { %v64_v25 = vor.u32 1.1754944e-38, %v63_v21  ;;  %vm62_vm4 = vcmp.eq.f32.partialorder %v61_v23, 8.507059e+37 }
  0x84   :  { %v665_v18 = vpop.eup %664 }
  0x85   :  { %v53_v19 = vmul.f32 %v665_v18, %v51_v17  ;;  %vm58_vm1 = vweird.f32 %v665_v18  ;;  %v238_v17 = vadd.f32 1.0, %v898_v16 }
  0x86   :  { %vm59_vm3 = vmor %vm57_vm2, %vm58_vm1 }
  0x87   :  { %v54_v20 = vsub.f32 1.0, %v53_v19  ;;  %v255_v19 = vadd.f32 5.0, %v898_v16 }
  0x89   :  { %v55_v22 = vmul.f32 %v665_v18, %v54_v20  ;;  %v258_v20 = vadd.f32 6.0, %v898_v16 }
  0x8b   :  { %v56_v24 = vadd.f32 %v665_v18, %v55_v22  ;;  %v245_v22 = vadd.f32 3.0, %v898_v16  ;;  %v262_v23 = vmul.f32 %v258_v20, %v255_v19 }
  0x8d   :  { %v60_v26 = vsel %vm59_vm3, %v665_v18, %v56_v24  ;;  %v240_v18 = vadd.f32 2.0, %v898_v16  ;;  %v906_v24 = vadd.f32 7.0, %v898_v16 }
  0x8e   :  { %v65_v27 = vsel %vm62_vm4, %v64_v25, %v60_v26  ;;  %v911_v26 = vadd.f32 4.0, %v898_v16 }
  0x8f   :  { %v66_v28 = vmul.f32 %v65_v27, %v49_v10  ;;  %v244_v21 = vmul.f32 %v240_v18, %v238_v17  ;;  %v914_v27 = vmul.f32 %v906_v24, %v262_v23 }
  0x91   :  { %v72_v29 = vpack.c.bf16 %v66_v28, %v66_v28  ;;  %v908_v25 = vmul.f32 %v245_v22, %v244_v21  ;;  %v917_v28 = vadd.f32 8.0, %v898_v16 }
  0x93   :  { %146 = vmatmul.bf16.vlgmr.msra.gmra.mxu0 %v72_v29  ;;  %v921_v29 = vmul.f32 %v911_v26, %v908_v25 }
  0x95   :  { %vm278_vm10 = vweird.f32 %v921_v29 }
 0x110   :  { %v147_v31 = vpop.f32.mrf.mxu0 }
 0x111   :  { %v148_v32 = vadd.f32 %v662_v30, %v147_v31  ;;  %v925_v30 = vmul.f32 %v917_v28, %v914_v27  ;;  %v256_v31 = vmul.f32 0.0, %v255_v19 }
 0x113   :  { %v151_v33 = vrot.slane %v148_v32, 4  ;;  %vm293_vm14 = vweird.f32 %v925_v30 }
 0x115   :  { %v152_v34 = vadd.f32 %v151_v33, %v148_v32  ;;  %v931_v33 = vadd.f32 6.0, %v815_v1 }
 0x117   :  { %v153_v35 = vrot.slane %v152_v34, 2  ;;  %vm358_vm11 = vweird.f32 %v931_v33 }
 0x118   :  { %v149_v36 = vpop.f32.mrf.mxu0 }
 0x119   :  { %v154_v37 = vadd.f32 %v153_v35, %v152_v34  ;;  %v239_v34 = vadd.f32 676.5204, %v238_v17  ;;  %v257_v35 = vadd.f32 12.507343, %v256_v31 }
 0x11b   :  { %v155_v38 = vrot.slane %v154_v37, 1 }
 0x11d   :  { %v156_v39 = vadd.f32 %v155_v38, %v154_v37  ;;  %v321_v37 = vadd.f32 2.0, %v815_v1  ;;  %v241_v38 = vmul.f32 %v240_v18, %v239_v34  ;;  %v299_v18 = vand.u32 2147483648, %v925_v30 }
 0x11f   :  { %v157_v40 = vmul.f32 0.125, %v156_v39  ;;  %v242_v39 = vmul.f32 -1259.1392, %v238_v17 }
 0x121   :  { %v158_v41 = vsub.f32 %v148_v32, %v157_v40  ;;  %v317_v32 = vadd.f32 1.0, %v815_v1  ;;  %v259_v40 = vmul.f32 %v258_v20, %v257_v35 }
 0x123   :  { %v159_v42 = vmul.f32 %v158_v41, %v158_v41  ;;  %v320_v36 = vmul.f32 %v317_v32, %v815_v1 }
 0x125   :  { %v160_v43 = vrot.slane %v159_v42, 4 }
 0x127   :  { %v161_v44 = vadd.f32 %v160_v43, %v159_v42  ;;  %v315_v43 = vmul.f32 0.0, %v815_v1 }
 0x129   :  { %v162_v45 = vrot.slane %v161_v44, 2  ;;  %v316_v51 = vadd.f32 1.0, %v315_v43 }
 0x12b   :  { %v163_v46 = vadd.f32 %v162_v45, %v161_v44  ;;  %v938_v44 = vmul.f32 %v321_v37, %v320_v36  ;;  %v325_v45 = vadd.f32 3.0, %v815_v1 }
 0x12d   :  { %v164_v47 = vrot.slane %v163_v46, 1 }
 0x12f   :  { %v165_v48 = vadd.f32 %v164_v47, %v163_v46  ;;  %v243_v47 = vadd.f32 %v242_v39, %v241_v38  ;;  %v282_v38 = vand.u32 2147483647, %v921_v29 }
 0x131   :  { %v166_v49 = vmul.f32 0.125, %v165_v48 }
 0x133   :  { %v167_v50 = vadd.f32 1e-05, %v166_v49 }
 0x135   :  { %666 = vrsqrt.f32 %v167_v50  ;;  %vm174_vm7 = vweird.f32 %v167_v50 }
 0x136   :  { %668 = vrcp.f32 %v921_v29 }
 0x137   :  { %670 = vrcp.f32 %v925_v30 }
 0x138   :  { %672 = vrcp.f32 %v931_v33 }
 0x13b   :  { %v667_v52 = vpop.eup %666 }
 0x13c   :  { %v169_v53 = vmul.f32 %v667_v52, %v167_v50  ;;  %vm175_vm6 = vweird.f32 %v667_v52  ;;  %v935_v42 = vpop.eup %668 }
 0x13d   :  { %vm176_vm8 = vmor %vm174_vm7, %vm175_vm6  ;;  %v942_v46 = vpop.eup %670  ;;  %v274_v49 = vmul.f32 %v935_v42, %v921_v29  ;;  %vm279_vm12 = vweird.f32 %v935_v42  ;;  %vm1013_vm6 = vcmp.eq.f32.partialorder %v282_v38, 8.507059e+37 }
 0x13e   :  { %v170_v54 = vmul.f32 %v667_v52, %v169_v53  ;;  %v289_v50 = vmul.f32 %v942_v46, %v925_v30  ;;  %v952_v53 = vadd.f32 4.0, %v815_v1  ;;  %vm294_vm15 = vweird.f32 %v942_v46  ;;  %vm991_vm2 = vmor %vm278_vm10, %vm279_vm12 }
 0x13f   :  { %vm1001_vm4 = vmor %vm293_vm14, %vm294_vm15 }
 0x140   :  { %v171_v55 = vmul.f32 0.5, %v170_v54  ;;  %v673_v54 = vpop.eup %672 }
 0x141   :  { %vm359_vm13 = vweird.f32 %v673_v54 }
 0x142   :  { %v172_v56 = vsub.f32 1.5, %v171_v55  ;;  %v246_v55 = vmul.f32 %v245_v22, %v243_v47  ;;  %v362_v22 = vand.u32 2147483647, %v931_v33  ;;  %vm983_vm1 = vmor %vm358_vm11, %vm359_vm13 }
 0x144   :  { %v173_v58 = vmul.f32 %v667_v52, %v172_v56  ;;  %v759_v56 = vmov 252.0   ;;  %vm363_vm3 = vcmp.eq.f32.partialorder %v362_v22, 8.507059e+37 }
 0x145   :  { %674 = vrcp.f32 %v759_v56 }
 0x146   :  { %v177_v59 = vsel %vm176_vm8, %v667_v52, %v173_v58  ;;  %v949_v52 = vmul.f32 %v325_v45, %v938_v44 }
 0x147   :  { %v178_v60 = vmul.f32 %v177_v59, %v69_v57  ;;  %v247_v57 = vmul.f32 771.3234, %v244_v21  ;;  %v265_v59 = vmul.f32 9.984369e-06, %v262_v23  ;;  %v364_v23 = vand.u32 2147483648, %v931_v33 }
 0x149   :  { %v179_v61 = vperm.slane %v178_v60, 0  ;;  %v275_v60 = vsub.f32 1.0, %v274_v49  ;;  %v248_v6 = vadd.f32 %v247_v57, %v246_v55  ;;  %v1023_v57 = vadd.f32 0.5, %v906_v24 }
 0x14b   :  { %v180_v63 = vmul.f32 %v179_v61, %v158_v41  ;;  %v260_v41 = vmul.f32 -0.1385711, %v255_v19  ;;  %v290_v61 = vsub.f32 1.0, %v289_v50  ;;  %v251_v35 = vmul.f32 %v911_v26, %v248_v6 }
 0x14d   :  { %v864_v0 = vadd.f32 %v663_v62, %v180_v63  ;;  %v261_v48 = vadd.f32 %v260_v41, %v259_v40  ;;  %v318_v62 = vmul.f32 %v317_v32, %v316_v51  ;;  %v957_v63 = vmul.f32 %v952_v53, %v949_v52 }
 0x14e   :  { %v365_v40 = vor.u32 1.1754944e-38, %v364_v23 }
 0x14f   :  { %v190_v2 = vsel %vm187_vm9, %v864_v0, -1e+30  ;;  %183 = vst [vmem:[%s1250_s6] sm:$0xff] %v864_v0  ;;  %v217_v4 = vmul.f32 %v876_v3, %v864_v0  ;;  %v264_v58 = vmul.f32 %v906_v24, %v261_v48  ;;  %v297_v48 = vand.u32 2147483647, %v925_v30  ;;  %s760_s6 = smov [#allocation9]  }
 0x150   :  { %192 = vmax.xlane.f32.xlu0 %v190_v2  ;;  %v960_v2 = vadd.f32 5.0, %v815_v1  ;;  %s591_s16 = sshll.u32 %s760_s6, 4  ;;  %s592_s16 = int_to_ptr.vmem [resolvable:$true] %s591_s16 }
 0x151   :  { %v266_v7 = vadd.f32 %v265_v59, %v264_v58  ;;  %vm1026_vm7 = vcmp.eq.f32.partialorder %v297_v48, 8.507059e+37 }
 0x152   :  { %v971_v17 = vmul.f32 %v960_v2, %v957_v63 }
 0x153   :  { %v269_v47 = vmul.f32 %v917_v28, %v266_v7 }
 0x154   :  { %676 = vrcp.f32 %v971_v17  ;;  %vm342_vm10 = vweird.f32 %v971_v17  ;;  %v346_v24 = vand.u32 2147483647, %v971_v17 }
 0x155   :  { %678 = vlog2.f32 %v931_v33 }
 0x156   :  { %680 = vlog2.f32 %v1023_v57  ;;  %vm347_vm13 = vcmp.eq.f32.partialorder %v346_v24, 8.507059e+37 }
 0x158   :  { %218 = vadd.xlane.f32.xlu0 %v217_v4  ;;  %v354_v4 = vmul.f32 %v673_v54, %v931_v33 }
 0x15a   :  { %v355_v19 = vsub.f32 1.0, %v354_v4 }
 0x1c3   :  { %v193_v9 = vpop.xlane.xlu0 %192 }
 0x1c4   :  { %v886_v10 = vmax.f32 %v883_v8, %v193_v9  ;;  %v276_v9 = vmul.f32 %v935_v42, %v275_v60 }
 0x1c6   :  { %v205_v11 = vsub.f32 %v883_v8, %v886_v10  ;;  %214 = vst.msk [vmem:[#allocation3] sm:$0xff] %vm36_vm5, %v886_v10  ;;  %197 = vperm.xlu1 %660, %v886_v10   ;;  %v277_v21 = vadd.f32 %v935_v42, %v276_v9 }
 0x1cb   :  { %v219_v13 = vpop.xlane.xlu0 %218 }
 0x1cc   :  { %v220_v14 = vadd.f32 %v219_v13, %v216_v12  ;;  %v964_v12 = vpop.eup %674  ;;  %v284_v13 = vand.u32 2147483648, %v921_v29 }
 0x1cd   :  { %v374_v34 = vmul.f32 252.0, %v964_v12  ;;  %v677_v50 = vpop.eup %676  ;;  %vm378_vm8 = vweird.f32 %v964_v12 }
 0x1ce   :  { %221 = vst.msk [vmem:[#allocation5] sm:$0xff] %vm36_vm5, %v220_v14  ;;  %v291_v14 = vmul.f32 %v942_v46, %v290_v61  ;;  %v285_v28 = vor.u32 1.1754944e-38, %v284_v13  ;;  %v338_v30 = vmul.f32 %v677_v50, %v971_v17  ;;  %vm343_vm11 = vweird.f32 %v677_v50  ;;  %v679_v4 = vpop.eup %678 }
 0x1cf   :  { %v375_v49 = vsub.f32 1.0, %v374_v34  ;;  %vm1038_vm12 = vmor %vm342_vm10, %vm343_vm11 }
 0x1d0   :  { %v292_v41 = vadd.f32 %v942_v46, %v291_v14  ;;  %v339_v58 = vsub.f32 1.0, %v338_v30 }
 0x1d1   :  { %v376_v59 = vmul.f32 %v964_v12, %v375_v49 }
 0x1d2   :  { %v340_v60 = vmul.f32 %v677_v50, %v339_v58 }
 0x1d3   :  { %v377_v61 = vadd.f32 %v964_v12, %v376_v59 }
 0x1d4   :  { %v341_v7 = vadd.f32 %v677_v50, %v340_v60 }
 0x1f0   :  { %393 = vadd.xlane.f32.xlu1 %v390_v15  ;;  %v319_v15 = vadd.f32 %v318_v62, %v815_v1  ;;  %v356_v1 = vmul.f32 %v673_v54, %v355_v19 }
 0x1f2   :  { %v322_v20 = vmul.f32 %v321_v37, %v319_v15  ;;  %v357_v39 = vadd.f32 %v673_v54, %v356_v1 }
 0x1f4   :  { %v323_v31 = vadd.f32 %v322_v20, %v320_v36  ;;  %v252_v36 = vmul.f32 -176.61504, %v908_v25  ;;  %v361_v29 = vsel %vm983_vm1, %v673_v54, %v357_v39  ;;  %v270_v25 = vmul.f32 1.5056327e-07, %v914_v27 }
 0x1f5   :  { %v366_v56 = vsel %vm363_vm3, %v365_v40, %v361_v29  ;;  %v296_v27 = vsel %vm1001_vm4, %v942_v46, %v292_v41  ;;  %v300_v54 = vor.u32 1.1754944e-38, %v299_v18  ;;  %v345_v20 = vsel %vm1038_vm12, %v677_v50, %v341_v7 }
 0x1f6   :  { %v326_v43 = vmul.f32 %v325_v45, %v323_v31  ;;  %v281_v45 = vsel %vm991_vm2, %v935_v42, %v277_v21  ;;  %v368_v46 = vmul.f32 %v366_v56, %v366_v56  ;;  %v253_v62 = vadd.f32 %v252_v36, %v251_v35  ;;  %v681_v35 = vpop.eup %680 }
 0x1f7   :  { %v271_v6 = vadd.f32 %v270_v25, %v269_v47  ;;  %v286_v13 = vsel %vm1013_vm6, %v285_v28, %v281_v45  ;;  %v301_v14 = vsel %vm1026_vm7, %v300_v54, %v296_v27  ;;  %v370_v21 = vmul.f32 0.6931472, %v679_v4 }
 0x1f8   :  { %v327_v51 = vadd.f32 %v326_v43, %v938_v44  ;;  %v371_v1 = vmul.f32 0.5, %v366_v56  ;;  %v287_v23 = vmul.f32 %v286_v13, %v253_v62  ;;  %v305_v36 = vadd.f32 0.5, %v898_v16 }
 0x1f9   :  { %v302_v31 = vmul.f32 %v301_v14, %v271_v6  ;;  %v307_v41 = vmul.f32 0.6931472, %v681_v35 }
 0x1fa   :  { %v330_v42 = vmul.f32 %v952_v53, %v327_v51  ;;  %v348_v53 = vand.u32 2147483648, %v971_v17  ;;  %v372_v38 = vsub.f32 %v370_v21, %v371_v1 }
 0x1fb   :  { %v303_v40 = vadd.f32 %v302_v31, %v287_v23 }
 0x1fc   :  { %v331_v33 = vadd.f32 %v330_v42, %v949_v52  ;;  %v1045_v52 = vsel %vm378_vm8, %v964_v12, %v377_v61  ;;  %v349_v18 = vor.u32 1.1754944e-38, %v348_v53 }
 0x1fd   :  { %v380_v17 = vmul.f32 %v1045_v52, %v368_v46 }
 0x1fe   :  { %v334_v15 = vmul.f32 %v960_v2, %v331_v33  ;;  %v350_v37 = vsel %vm347_vm13, %v349_v18, %v345_v20 }
 0x1ff   :  { %v381_v12 = vsub.f32 0.008333334, %v380_v17 }
 0x200   :  { %v335_v32 = vadd.f32 %v334_v15, %v957_v63 }
 0x201   :  { %v382_v34 = vmul.f32 %v381_v12, %v368_v46 }
 0x202   :  { %v351_v43 = vmul.f32 %v350_v37, %v335_v32 }
 0x203   :  { %v383_v39 = vsub.f32 0.083333336, %v382_v34 }
 0x205   :  { %v384_v47 = vmul.f32 %v383_v39, %v368_v46 }
 0x207   :  { %v385_v26 = vsub.f32 %v372_v38, %v384_v47 }
 0x209   :  { %v386_v48 = vsub.f32 %v385_v26, %v351_v43 }
 0x20b   :  { %v387_v49 = vmul.f32 %v898_v16, %v386_v48 }
 0x20d   :  { %v392_v25 = vsel %vm31_vm0, %v387_v49, 0.0 }
 0x20e   :  { %476 = vadd.xlane.f32.xlu0 %v392_v25 }
 0x238   :  { %v198_v19 = vpop.permute.xlu1 %197 }
 0x239   :  { %v200_v22 = vsub.f32 %v864_v0, %v198_v19  ;;  %v308_v0 = vmul.f32 %v307_v41, %v305_v36 }
 0x23b   :  { %v201_v2 = vmul.f32 1.442695, %v200_v22  ;;  %v309_v50 = vadd.f32 0.9189385, %v308_v0 }
 0x23d   :  { %682 = vpow2.f32 %v201_v2  ;;  %v310_v28 = vsub.f32 %v309_v50, %v1023_v57 }
 0x23e   :  { %684 = vlog2.f32 %v303_v40 }
 0x243   :  { %v683_v29 = vpop.eup %682 }
 0x244   :  { %v203_v63 = vsel %vm187_vm9, %v683_v29, 0.0  ;;  %v685_v45 = vpop.eup %684 }
 0x245   :  { %209 = vadd.xlane.f32.xlu2 %v203_v63  ;;  %v312_v51 = vmul.f32 0.6931472, %v685_v45 }
 0x247   :  { %v313_v55 = vadd.f32 %v312_v51, %v310_v28 }
 0x249   :  { %v391_v30 = vsel %vm31_vm0, %v313_v55, 0.0 }
 0x24d   :  { %223 = vadd.xlane.f32.xlu2 %v876_v3 }
 0x255   :  { %472 = vadd.xlane.f32.xlu2 %v391_v30 }
 0x263   :  { %v1067_v56 = vpop.xlane.xlu1 %393 }
 0x264   :  { %v1070_v16 = vadd.f32 -1.0, %v1067_v56  ;;  %v1081_v59 = vadd.f32 6.0, %v1067_v56  ;;  %v483_v53 = vadd.f32 1.0, %v1067_v56  ;;  %v487_v6 = vadd.f32 2.0, %v1067_v56 }
 0x265   :  { %v481_v13 = vmul.f32 0.0, %v1067_v56  ;;  %v1117_v17 = vadd.f32 3.0, %v1067_v56  ;;  %v1130_v31 = vadd.f32 4.0, %v1067_v56  ;;  %v1141_v36 = vadd.f32 5.0, %v1067_v56 }
 0x266   :  { %v396_v27 = vadd.f32 1.0, %v1070_v16  ;;  %v398_v54 = vadd.f32 2.0, %v1070_v16  ;;  %v413_v42 = vadd.f32 5.0, %v1070_v16  ;;  %v416_v57 = vadd.f32 6.0, %v1070_v16 }
 0x267   :  { %v403_v3 = vadd.f32 3.0, %v1070_v16  ;;  %v1078_v5 = vadd.f32 7.0, %v1070_v16  ;;  %v1086_v46 = vadd.f32 4.0, %v1070_v16  ;;  %v1092_v24 = vadd.f32 8.0, %v1070_v16 }
 0x268   :  { %v402_v44 = vmul.f32 %v398_v54, %v396_v27  ;;  %v420_v58 = vmul.f32 %v416_v57, %v413_v42  ;;  %686 = vrcp.f32 %v1081_v59  ;;  %v1105_v4 = vmul.f32 %v483_v53, %v1067_v56 }
 0x269   :  { %v414_v7 = vmul.f32 0.0, %v413_v42  ;;  %v397_v14 = vadd.f32 676.5204, %v396_v27  ;;  %v482_v21 = vadd.f32 1.0, %v481_v13  ;;  %v400_v22 = vmul.f32 -1259.1392, %v396_v27 }
 0x26a   :  { %v1083_v33 = vmul.f32 %v403_v3, %v402_v44  ;;  %v1089_v60 = vmul.f32 %v1078_v5, %v420_v58  ;;  %v1114_v15 = vmul.f32 %v487_v6, %v1105_v4  ;;  %v418_v34 = vmul.f32 -0.1385711, %v413_v42 }
 0x26b   :  { %v415_v18 = vadd.f32 12.507343, %v414_v7  ;;  %v399_v12 = vmul.f32 %v398_v54, %v397_v14  ;;  %v484_v38 = vmul.f32 %v483_v53, %v482_v21  ;;  %vm524_vm0 = vweird.f32 %v1081_v59 }
 0x26c   :  { %v1098_v61 = vmul.f32 %v1086_v46, %v1083_v33  ;;  %v1102_v62 = vmul.f32 %v1092_v24, %v1089_v60  ;;  %v1127_v23 = vmul.f32 %v1117_v17, %v1114_v15  ;;  %v405_v29 = vmul.f32 771.3234, %v402_v44 }
 0x26d   :  { %v417_v32 = vmul.f32 %v416_v57, %v415_v18  ;;  %v401_v39 = vadd.f32 %v400_v22, %v399_v12  ;;  %v485_v0 = vadd.f32 %v484_v38, %v1067_v56  ;;  %v423_v50 = vmul.f32 9.984369e-06, %v420_v58 }
 0x26e   :  { %688 = vrcp.f32 %v1098_v61  ;;  %v1110_v9 = vpop.eup %686  ;;  %v1138_v40 = vmul.f32 %v1130_v31, %v1127_v23  ;;  %v530_v25 = vand.u32 2147483648, %v1081_v59  ;;  %v528_v28 = vand.u32 2147483647, %v1081_v59 }
 0x26f   :  { %690 = vrcp.f32 %v1102_v62  ;;  %v520_v19 = vmul.f32 %v1110_v9, %v1081_v59  ;;  %v419_v41 = vadd.f32 %v418_v34, %v417_v32  ;;  %v404_v48 = vmul.f32 %v403_v3, %v401_v39 }
 0x270   :  { %v1148_v63 = vmul.f32 %v1141_v36, %v1138_v40  ;;  %vm525_vm9 = vweird.f32 %v1110_v9  ;;  %v488_v30 = vmul.f32 %v487_v6, %v485_v0  ;;  %vm436_vm15 = vweird.f32 %v1098_v61 }
 0x271   :  { %v521_v35 = vsub.f32 1.0, %v520_v19  ;;  %v422_v49 = vmul.f32 %v1078_v5, %v419_v41  ;;  %vm1157_vm14 = vmor %vm524_vm0, %vm525_vm9  ;;  %v406_v54 = vadd.f32 %v405_v29, %v404_v48  ;;  %vm451_vm2 = vweird.f32 %v1102_v62 }
 0x272   :  { %692 = vrcp.f32 %v1148_v63  ;;  %v531_v57 = vor.u32 1.1754944e-38, %v530_v25  ;;  %v442_v44 = vand.u32 2147483648, %v1098_v61  ;;  %v457_v3 = vand.u32 2147483648, %v1102_v62 }
 0x273   :  { %v522_v43 = vmul.f32 %v1110_v9, %v521_v35  ;;  %v424_v42 = vadd.f32 %v423_v50, %v422_v49  ;;  %vm529_vm4 = vcmp.eq.f32.partialorder %v528_v28, 8.507059e+37  ;;  %v440_v7 = vand.u32 2147483647, %v1098_v61 }
 0x274   :  { %v1121_v20 = vpop.eup %688  ;;  %v455_v14 = vand.u32 2147483647, %v1102_v62  ;;  %v206_v18 = vmul.f32 1.442695, %v205_v11  ;;  %v409_v19 = vmul.f32 %v1086_v46, %v406_v54  ;;  %v428_v22 = vmul.f32 1.5056327e-07, %v1089_v60 }
 0x275   :  { %v1123_v1 = vpop.eup %690  ;;  %v432_v2 = vmul.f32 %v1121_v20, %v1098_v61  ;;  %v523_v45 = vadd.f32 %v1110_v9, %v522_v43  ;;  %vm437_vm1 = vweird.f32 %v1121_v20  ;;  %v489_v61 = vadd.f32 %v488_v30, %v1105_v4 }
 0x276   :  { %v447_v37 = vmul.f32 %v1123_v1, %v1102_v62  ;;  %vm452_vm3 = vweird.f32 %v1123_v1  ;;  %vm1172_vm6 = vmor %vm436_vm15, %vm437_vm1  ;;  %v427_v12 = vmul.f32 %v1092_v24, %v424_v42  ;;  %v1194_v32 = vadd.f32 0.5, %v1078_v5  ;;  %v222_v42 = vld [vmem:[#allocation6] sm:$0xff] }
 0x277   :  { %v433_v47 = vsub.f32 1.0, %v432_v2  ;;  %v527_v58 = vsel %vm1157_vm14, %v1110_v9, %v523_v45  ;;  %v410_v9 = vmul.f32 -176.61504, %v1083_v33  ;;  %vm1186_vm7 = vmor %vm451_vm2, %vm452_vm3  ;;  %v443_v11 = vor.u32 1.1754944e-38, %v442_v44 }
 0x278   :  { %v448_v26 = vsub.f32 1.0, %v447_v37  ;;  %v532_v8 = vsel %vm529_vm4, %v531_v57, %v527_v58  ;;  %v1196_v10 = vpop.eup %692  ;;  %v458_v33 = vor.u32 1.1754944e-38, %v457_v3  ;;  %vm441_vm8 = vcmp.eq.f32.partialorder %v440_v7, 8.507059e+37 }
 0x279   :  { %v434_v51 = vmul.f32 %v1121_v20, %v433_v47  ;;  %vm456_vm10 = vcmp.eq.f32.partialorder %v455_v14, 8.507059e+37  ;;  %694 = vpow2.f32 %v206_v18  ;;  %v492_v60 = vmul.f32 %v1117_v17, %v489_v61  ;;  %v204_v17 = vld [vmem:[#allocation4] sm:$0xff] }
 0x27a   :  { %v449_v55 = vmul.f32 %v1123_v1, %v448_v26  ;;  %v534_v5 = vmul.f32 %v532_v8, %v532_v8  ;;  %v411_v24 = vadd.f32 %v410_v9, %v409_v19  ;;  %v429_v4 = vadd.f32 %v428_v22, %v427_v12 }
 0x27b   :  { %v435_v53 = vadd.f32 %v1121_v20, %v434_v51  ;;  %696 = vlog2.f32 %v1194_v32  ;;  %v504_v2 = vmul.f32 %v1196_v10, %v1148_v63  ;;  %v463_v29 = vadd.f32 0.5, %v1070_v16 }
 0x27c   :  { %v450_v13 = vadd.f32 %v1123_v1, %v449_v55  ;;  %v539_v37 = vmul.f32 %v534_v5, %v1045_v52  ;;  %698 = vlog2.f32 %v1081_v59  ;;  %vm508_vm11 = vweird.f32 %v1148_v63 }
 0x27d   :  { %v439_v46 = vsel %vm1172_vm6, %v1121_v20, %v435_v53  ;;  %v493_v20 = vadd.f32 %v492_v60, %v1114_v15  ;;  %v505_v41 = vsub.f32 1.0, %v504_v2  ;;  %vm509_vm12 = vweird.f32 %v1196_v10 }
 0x27e   :  { %v454_v62 = vsel %vm1186_vm7, %v1123_v1, %v450_v13  ;;  %v444_v34 = vsel %vm441_vm8, %v443_v11, %v439_v46  ;;  %v540_v26 = vsub.f32 0.008333334, %v539_v37  ;;  %v512_v51 = vand.u32 2147483647, %v1148_v63  ;;  %vm1221_vm13 = vmor %vm508_vm11, %vm509_vm12 }
 0x27f   :  { %v459_v35 = vsel %vm456_vm10, %v458_v33, %v454_v62  ;;  %v445_v38 = vmul.f32 %v444_v34, %v411_v24  ;;  %v695_v39 = vpop.eup %694  ;;  %v496_v47 = vmul.f32 %v1130_v31, %v493_v20  ;;  %v506_v15 = vmul.f32 %v1196_v10, %v505_v41  ;;  %v230_v62 = vld [vmem:[#allocation3] sm:$0xff]  ;;  %v550_v34 = vld [vmem:[#allocation5] sm:$0xff] }
 0x280   :  { %v460_v1 = vmul.f32 %v459_v35, %v429_v4  ;;  %v208_v48 = vmul.f32 %v695_v39, %v204_v17  ;;  %v541_v45 = vmul.f32 %v540_v26, %v534_v5  ;;  %v514_v31 = vand.u32 2147483648, %v1148_v63 }
 0x281   :  { %v697_v43 = vpop.eup %696  ;;  %v497_v25 = vadd.f32 %v496_v47, %v1127_v23  ;;  %v507_v16 = vadd.f32 %v1196_v10, %v506_v15  ;;  %v537_v27 = vmul.f32 0.5, %v532_v8  ;;  %vm513_vm0 = vcmp.eq.f32.partialorder %v512_v51, 8.507059e+37  ;;  %v477_v33 = vpop.xlane.xlu0 %476 }
 0x282   :  { %v461_v0 = vadd.f32 %v460_v1, %v445_v38  ;;  %v465_v49 = vmul.f32 0.6931472, %v697_v43  ;;  %v699_v59 = vpop.eup %698  ;;  %v542_v54 = vsub.f32 0.083333336, %v541_v45  ;;  %v515_v57 = vor.u32 1.1754944e-38, %v514_v31 }
 0x283   :  { %v500_v23 = vmul.f32 %v1141_v36, %v497_v25  ;;  %v536_v30 = vmul.f32 0.6931472, %v699_v59  ;;  %v511_v3 = vsel %vm1221_vm13, %v1196_v10, %v507_v16  ;;  %v645_v10 = vadd.f32 -8.0, %v1067_v56 }
 0x284   :  { %700 = vlog2.f32 %v461_v0  ;;  %v466_v28 = vmul.f32 %v465_v49, %v463_v29  ;;  %v543_v13 = vmul.f32 %v542_v54, %v534_v5  ;;  %v516_v36 = vsel %vm513_vm0, %v515_v57, %v511_v3 }
 0x285   :  { %v501_v6 = vadd.f32 %v500_v23, %v1138_v40  ;;  %v538_v7 = vsub.f32 %v536_v30, %v537_v27  ;;  %vm561_vm9 = vcmask 0  }
 0x286   :  { %v467_v44 = vadd.f32 0.9189385, %v466_v28 }
 0x287   :  { %v517_v9 = vmul.f32 %v516_v36, %v501_v6  ;;  %v544_v21 = vsub.f32 %v538_v7, %v543_v13 }
 0x288   :  { %v468_v18 = vsub.f32 %v467_v44, %v1194_v32 }
 0x289   :  { %v545_v11 = vsub.f32 %v544_v21, %v517_v9 }
 0x28a   :  { %v701_v58 = vpop.eup %700 }
 0x28b   :  { %v470_v19 = vmul.f32 0.6931472, %v701_v58  ;;  %v546_v5 = vmul.f32 %v645_v10, %v545_v11 }
 0x28d   :  { %v471_v61 = vadd.f32 %v470_v19, %v468_v18 }
 0x2b8   :  { %v210_v50 = vpop.xlane.xlu2 %209 }
 0x2b9   :  { %v211_v52 = vadd.f32 %v210_v50, %v208_v48 }
 0x2bb   :  { %213 = vst.msk [vmem:[#allocation4] sm:$0xff] %vm36_vm5, %v211_v52 }
 0x2c0   :  { %v224_v53 = vpop.xlane.xlu2 %223 }
 0x2c1   :  { %v225_v63 = vadd.f32 %v224_v53, %v222_v42 }
 0x2c2   :  { %v231_v14 = vld [vmem:[#allocation4] sm:$0xff] }
 0x2c3   :  { %226 = vst.msk [vmem:[#allocation6] sm:$0xff] %vm36_vm5, %v225_v63  ;;  %702 = vlog2.f32 %v231_v14 }
 0x2c8   :  { %v473_v12 = vpop.xlane.xlu2 %472 }
 0x2c9   :  { %v703_v22 = vpop.eup %702  ;;  %v474_v8 = vsub.f32 %v471_v61, %v473_v12 }
 0x2ca   :  { %v233_v40 = vmul.f32 0.6931472, %v703_v22  ;;  %v548_v24 = vld [vmem:[#allocation6] sm:$0xff] }
 0x2cb   :  { %v475_v46 = vadd.f32 -8.525162, %v474_v8 }
 0x2cc   :  { %v234_v60 = vadd.f32 %v233_v40, %v230_v62 }
 0x2cd   :  { %v478_v4 = vadd.f32 %v477_v33, %v475_v46 }
 0x2ce   :  { %235 = vst.msk [vmem:[%s1251_s7] sm:$0xff] %vm36_vm5, %v234_v60  ;;  %v549_v32 = vmul.f32 %v548_v24, %v234_v60  ;;  %s593_s7 = sshll.u32 %s1253_s9, 4  ;;  %s594_s7 = int_to_ptr.hbm [resolvable:$true] %s593_s7 }
 0x2cf   :  { %v547_v35 = vsub.f32 %v478_v4, %v546_v5 }
 0x2d0   :  { %v551_v2 = vsub.f32 %v549_v32, %v550_v34 }
 0x2d1   :  { %v563_v20 = vrot.slane %v547_v35, 4 }
 0x2d2   :  { %v552_v56 = vadd.f32 %v551_v2, %v547_v35 }
 0x2d3   :  { %v564_v37 = vadd.f32 %v563_v20, %v547_v35 }
 0x2d4   :  { %v553_v38 = vsel %vm36_vm5, %v552_v56, 0.0 }
 0x2d5   :  { %v554_v1 = vrot.slane %v553_v38, 4  ;;  %v565_v39 = vrot.slane %v564_v37, 2 }
 0x2d7   :  { %v555_v41 = vadd.f32 %v554_v1, %v553_v38  ;;  %v566_v43 = vadd.f32 %v565_v39, %v564_v37 }
 0x2d9   :  { %v556_v17 = vrot.slane %v555_v41, 2  ;;  %v567_v47 = vrot.slane %v566_v43, 1 }
 0x2db   :  { %v557_v26 = vadd.f32 %v556_v17, %v555_v41  ;;  %v568_v0 = vadd.f32 %v567_v47, %v566_v43 }
 0x2dd   :  { %v558_v48 = vrot.slane %v557_v26, 1  ;;  %v569_v29 = vmul.f32 0.125, %v568_v0 }
 0x2df   :  { %v559_v49 = vadd.f32 %v558_v48, %v557_v26  ;;  %570 = vst.msk [vmem:[#allocation9] sm:$0x1] %vm561_vm9, %v569_v29 }
 0x2e0   :  { %596 = dma.vmem_to_hbm [thread:$0]  %s592_s16, 16, %s594_s7, [#allocation10]  }
 0x2e1   :  { %v560_v15 = vmul.f32 0.125, %v559_v49 }
 0x2e3   :  { %562 = vst.msk [vmem:[#allocation7] sm:$0x1] %vm561_vm9, %v560_v15 }
 0x2e4   :  { %585 = dma.vmem_to_hbm [thread:$0]  %s581_s18, 16, %s583_s20, [#allocation8]  }
 0x2e5   :  { %752 = dma.done.wait [#allocation8], 16  }
 0x2e6   :  { %753 = vsyncadd [#allocation8], 4294967280 }
 0x2e7   :  { %754 = dma.done.wait [#allocation10], 16  }
 0x2e8   :  { %755 = vsyncadd [#allocation10], 4294967280 }
 0x2e9   :  { %609 = vsyncpa [#allocation8], 1 }
 0x2ea   :  { %610 = vsyncpa [#allocation10], 1 }

</bundles_post_ra>
